<compile_context>
chip_gen: v7x
topology: tpu7x:2x2x1
jax: 0.10.0
libtpu: 0.0.40
codegen_flags: <defaults>
</compile_context>

<pallas_src>
import functools

import jax
import jax.numpy as jnp
import numpy as np
from jax.experimental import pallas as pl
from jax.experimental.pallas import tpu as pltpu


_PARAM_ORDER = ("wq", "bq", "wkv", "bkv", "wo", "bo",
                "g1", "bt1", "w1", "bf1", "w2", "bf2", "g2", "bt2")


# ----------------------------------------------------------------------------
# Fused EncoderLayer kernel.  Grid = (batch blocks, q tiles); q is innermost.
# ----------------------------------------------------------------------------
def _encoder_layer_kernel(n_head,
                          xq_ref, xkv_ref, bias_ref,
                          wq_ref, bq_ref, wkv_ref, bkv_ref,
                          wo_ref, bo_ref,
                          g1_ref, bt1_ref,
                          w1_ref, bf1_ref, w2_ref, bf2_ref,
                          g2_ref, bt2_ref,
                          o_ref,
                          kv_ref, ctx_ref):
    Bt, S, D = xkv_ref.shape
    _, Tq, _ = xq_ref.shape
    dh = D // n_head
    eps = jnp.float32(1e-12)          # LayerNorm eps in the reference repo

    # ---- K/V projection: once per batch-block (q is the inner grid axis) ---
    @pl.when(pl.program_id(1) == 0)
    def _():
        xk2 = xkv_ref[...].reshape(Bt * S, D)            # bf16
        kv = jnp.dot(xk2, wkv_ref[...],
                     preferred_element_type=jnp.float32) + bkv_ref[...]
        kv_ref[...] = kv.reshape(Bt, S, 2 * D).astype(kv_ref.dtype)   # bf16

    xq3 = xq_ref[...]                                    # (Bt, Tq, D) bf16
    xq2 = xq3.reshape(Bt * Tq, D)
    xq_f32 = xq2.astype(jnp.float32)

    # ---- Q projection (1/sqrt(dh) already folded into wq/bq) ---------------
    q = jnp.dot(xq2, wq_ref[...],
                preferred_element_type=jnp.float32) + bq_ref[...]
    q = q.reshape(Bt, Tq, D).astype(jnp.bfloat16)

    # ---- multi-head self-attention over the q tile --------------------------
    bias = bias_ref[...]              # (Bt, 1, S) additive f32, hoisted
    kv = kv_ref[...]                  # (Bt, S, 2D) bf16, resident across q tiles
    for h in range(n_head):           # n_head small & static
        qh = q[:, :, h * dh:(h + 1) * dh]                       # (Bt, Tq, dh)
        kh = kv[:, :, h * dh:(h + 1) * dh]                      # (Bt, S,  dh)
        vh = kv[:, :, D + h * dh:D + (h + 1) * dh]              # (Bt, S,  dh)
        s = jnp.einsum('bqd,bkd->bqk', qh, kh,
                       preferred_element_type=jnp.float32)      # (Bt, Tq, S)
        s = s + bias                                            # additive mask
        s = s - jnp.max(s, axis=-1, keepdims=True)              # XLU reduce
        p = jnp.exp(s)
        p = p * pl.reciprocal(jnp.sum(p, axis=-1, keepdims=True), approx=True)
        ctx_ref[:, :, h * dh:(h + 1) * dh] = jnp.einsum(
            'bqk,bkd->bqd', p.astype(jnp.bfloat16), vh,
            preferred_element_type=jnp.float32).astype(ctx_ref.dtype)

    ctx = ctx_ref[...].reshape(Bt * Tq, D)                      # bf16

    # ---- output projection + residual + LayerNorm 1 (rsqrt -> EUP) ---------
    attn = jnp.dot(ctx, wo_ref[...],
                   preferred_element_type=jnp.float32) + bo_ref[...]
    y = xq_f32 + attn                                 # dropout1 omitted (eval)
    mu = jnp.mean(y, axis=-1, keepdims=True)
    var = jnp.mean((y - mu) ** 2, axis=-1, keepdims=True)
    y = (y - mu) * jax.lax.rsqrt(var + eps)
    y = g1_ref[...] * y + bt1_ref[...]

    # ---- position-wise feed-forward (bf16 MXU inputs, f32 accumulate) ------
    h1 = jnp.dot(y.astype(jnp.bfloat16), w1_ref[...],
                 preferred_element_type=jnp.float32) + bf1_ref[...]
    h1 = jnp.maximum(h1, 0.0)
    h2 = jnp.dot(h1.astype(jnp.bfloat16), w2_ref[...],
                 preferred_element_type=jnp.float32) + bf2_ref[...]

    # ---- residual + LayerNorm 2 ---------------------------------------------
    z = y + h2                                        # dropout2 omitted (eval)
    mu2 = jnp.mean(z, axis=-1, keepdims=True)
    var2 = jnp.mean((z - mu2) ** 2, axis=-1, keepdims=True)
    z = (z - mu2) * jax.lax.rsqrt(var2 + eps)
    z = g2_ref[...] * z + bt2_ref[...]

    o_ref[...] = z.reshape(Bt, Tq, D).astype(o_ref.dtype)


def encoder_layer_pallas(x, attn_bias, params, n_head, *,
                         block_b=None, block_q=None):
    """One EncoderLayer.

    x: (B, S, D) bf16 activations.
    attn_bias: (B, 1, S) f32 additive key-padding bias (0 valid / -10000 pad).
    """
    B, S, D = x.shape
    F = params["w1"].shape[1]
    if block_b is None:
        # >=2 parallel grid steps along batch so v7x's 2 TCs both get work.
        block_b = 1 if B >= 2 else B
    if block_q is None:
        block_q = S if S <= 256 else 256
    assert B % block_b == 0 and S % block_q == 0
    assert block_q == S or block_q % 8 == 0
    plist = [params[name] for name in _PARAM_ORDER]

    def const_spec(shape):
        zeros = (0,) * len(shape)
        return pl.BlockSpec(shape, lambda b, q, _z=zeros: _z)   # VMEM-resident

    in_specs = [
        pl.BlockSpec((block_b, block_q, D), lambda b, q: (b, q, 0)),   # x q-tile
        pl.BlockSpec((block_b, S, D), lambda b, q: (b, 0, 0)),         # x full (K/V)
        pl.BlockSpec((block_b, 1, S), lambda b, q: (b, 0, 0)),         # mask bias
    ] + [const_spec(p.shape) for p in plist]

    # advisory cost estimate for XLA's scheduler
    flops = (2 * B * S * D * (2 * D)      # K/V projection
             + 2 * B * S * D * D          # Q projection
             + 4 * B * S * S * D          # scores + ctx (all heads)
             + 2 * B * S * D * D          # output projection
             + 4 * B * S * D * F)         # FFN
    cost = pl.CostEstimate(
        flops=int(flops),
        transcendentals=int(B * n_head * S * S),          # exp in softmax
        bytes_accessed=int(2 * x.size * x.dtype.itemsize
                           + attn_bias.size * attn_bias.dtype.itemsize
                           + sum(p.size * p.dtype.itemsize for p in plist)),
    )

    return pl.pallas_call(
        functools.partial(_encoder_layer_kernel, n_head),
        out_shape=jax.ShapeDtypeStruct((B, S, D), x.dtype),
        grid=(B // block_b, S // block_q),
        in_specs=in_specs,
        out_specs=pl.BlockSpec((block_b, block_q, D), lambda b, q: (b, q, 0)),
        scratch_shapes=[
            pltpu.VMEM((block_b, S, 2 * D), jnp.bfloat16),        # K|V slab
            pltpu.VMEM((block_b, block_q, D), jnp.bfloat16),      # ctx slab
        ],
        compiler_params=pltpu.CompilerParams(
            dimension_semantics=("parallel", "arbitrary"),
            vmem_limit_bytes=32 * 1024 * 1024),
        cost_estimate=cost,
    )(x, x, attn_bias, *plist)


# ----------------------------------------------------------------------------
# Embedding (glue: gather + sinusoidal positional encoding, plain JAX)
# ----------------------------------------------------------------------------
def sinusoidal_encoding(max_len, d_model):
    pos = jnp.arange(max_len, dtype=jnp.float32)[:, None]
    i2 = jnp.arange(0, d_model, 2, dtype=jnp.float32)
    angle = pos / jnp.power(10000.0, i2 / d_model)
    pe = jnp.zeros((max_len, d_model), jnp.float32)
    pe = pe.at[:, 0::2].set(jnp.sin(angle))
    pe = pe.at[:, 1::2].set(jnp.cos(angle))
    return pe


def embed(tokens, emb_table, pos_enc, act_dtype):
    # Token-embedding gather is data-dependent indexing -> plain JAX glue.
    S = tokens.shape[1]
    x = emb_table[tokens].astype(jnp.float32) + pos_enc[:S][None, :, :]
    return x.astype(act_dtype)        # emb dropout omitted (eval mode)


def mask_to_bias(src_mask):
    """(B,1,S) 0/1 padding mask -> additive f32 bias (0 valid / -10000 pad)."""
    return jnp.where(src_mask == 0, jnp.float32(-10000.0),
                     jnp.float32(0.0)).astype(jnp.float32)


def encoder_forward(tokens, src_mask, emb_table, pos_enc, prepped_layers,
                    n_head, act_dtype=jnp.bfloat16):
    x = embed(tokens, emb_table, pos_enc, act_dtype)
    bias = mask_to_bias(src_mask)     # computed once, reused by every layer
    for pp in prepped_layers:
        x = encoder_layer_pallas(x, bias, pp, n_head)
    return x


# ----------------------------------------------------------------------------
# Parameter init (PyTorch-module shapes) + kernel-layout preparation
# ----------------------------------------------------------------------------
def init_encoder_params(key, enc_vocab_size, d_model, ffn_hidden, n_layers):
    def linear(k, fan_in, fan_out):
        kw, kb = jax.random.split(k)
        bound = 1.0 / np.sqrt(fan_in)
        w = jax.random.uniform(kw, (fan_in, fan_out), jnp.float32, -bound, bound)
        b = jax.random.uniform(kb, (1, fan_out), jnp.float32, -bound, bound)
        return w, b

    k_emb, *k_layers = jax.random.split(key, 1 + n_layers)
    emb = jax.random.normal(k_emb, (enc_vocab_size, d_model), jnp.float32) * 0.02
    emb = emb.at[1].set(0.0)          # nn.Embedding(padding_idx=1)

    layers = []
    for kl in k_layers:
        ks = jax.random.split(kl, 6)
        wq, bq = linear(ks[0], d_model, d_model)
        wk, bk = linear(ks[1], d_model, d_model)
        wv, bv = linear(ks[2], d_model, d_model)
        wo, bo = linear(ks[3], d_model, d_model)
        w1, bf1 = linear(ks[4], d_model, ffn_hidden)
        w2, bf2 = linear(ks[5], ffn_hidden, d_model)
        layers.append(dict(
            wq=wq, bq=bq, wk=wk, bk=bk, wv=wv, bv=bv, wo=wo, bo=bo,
            g1=jnp.ones((1, d_model), jnp.float32),
            bt1=jnp.zeros((1, d_model), jnp.float32),
            w1=w1, bf1=bf1, w2=w2, bf2=bf2,
            g2=jnp.ones((1, d_model), jnp.float32),
            bt2=jnp.zeros((1, d_model), jnp.float32),
        ))
    return emb, layers


def prep_layer_params(p, n_head, weight_dtype=jnp.bfloat16):
    """Fuse K/V weights, fold attention scale into Q, cast weights to bf16."""
    D = p["wq"].shape[0]
    dh = D // n_head
    scale = jnp.float32(1.0 / np.sqrt(dh))
    wkv = jnp.concatenate([p["wk"], p["wv"]], axis=1)
    bkv = jnp.concatenate([p["bk"], p["bv"]], axis=1)
    return dict(
        wq=(p["wq"] * scale).astype(weight_dtype),
        bq=(p["bq"] * scale).astype(jnp.float32),
        wkv=wkv.astype(weight_dtype), bkv=bkv.astype(jnp.float32),
        wo=p["wo"].astype(weight_dtype), bo=p["bo"].astype(jnp.float32),
        g1=p["g1"].astype(jnp.float32), bt1=p["bt1"].astype(jnp.float32),
        w1=p["w1"].astype(weight_dtype), bf1=p["bf1"].astype(jnp.float32),
        w2=p["w2"].astype(weight_dtype), bf2=p["bf2"].astype(jnp.float32),
        g2=p["g2"].astype(jnp.float32), bt2=p["bt2"].astype(jnp.float32),
    )


# ----------------------------------------------------------------------------
# Pure-JAX reference (same bf16 MXU-input / f32-accumulate precision points)
# ----------------------------------------------------------------------------
def _ln(x, g, b, eps=1e-12):
    mu = jnp.mean(x, axis=-1, keepdims=True)
    var = jnp.mean((x - mu) ** 2, axis=-1, keepdims=True)
    return g * ((x - mu) / jnp.sqrt(var + eps)) + b


def encoder_layer_ref(x_bf, attn_bias, pp, n_head):
    B, S, D = x_bf.shape
    dh = D // n_head
    x_f32 = x_bf.astype(jnp.float32)
    q = (jnp.dot(x_bf, pp["wq"], preferred_element_type=jnp.float32)
         + pp["bq"]).astype(jnp.bfloat16)
    kv = (jnp.dot(x_bf, pp["wkv"], preferred_element_type=jnp.float32)
          + pp["bkv"]).astype(jnp.bfloat16)
    k, v = kv[..., :D], kv[..., D:]
    qh = q.reshape(B, S, n_head, dh).transpose(0, 2, 1, 3)
    kh = k.reshape(B, S, n_head, dh).transpose(0, 2, 1, 3)
    vh = v.reshape(B, S, n_head, dh).transpose(0, 2, 1, 3)
    s = jnp.einsum('bhqd,bhkd->bhqk', qh, kh,
                   preferred_element_type=jnp.float32)
    s = s + attn_bias[:, None, :, :]              # scale already folded into q
    p = jax.nn.softmax(s, axis=-1)
    ctx = jnp.einsum('bhqk,bhkd->bhqd', p.astype(jnp.bfloat16), vh,
                     preferred_element_type=jnp.float32)
    ctx = ctx.transpose(0, 2, 1, 3).reshape(B, S, D).astype(jnp.bfloat16)
    attn = jnp.dot(ctx, pp["wo"], preferred_element_type=jnp.float32) + pp["bo"]
    y = _ln(x_f32 + attn, pp["g1"], pp["bt1"])
    h1 = jnp.maximum(jnp.dot(y.astype(jnp.bfloat16), pp["w1"],
                             preferred_element_type=jnp.float32) + pp["bf1"], 0.0)
    h2 = jnp.dot(h1.astype(jnp.bfloat16), pp["w2"],
                 preferred_element_type=jnp.float32) + pp["bf2"]
    z = _ln(y + h2, pp["g2"], pp["bt2"])
    return z


def encoder_ref(tokens, src_mask, emb_table, pos_enc, prepped_layers, n_head,
                act_dtype=jnp.bfloat16):
    x = embed(tokens, emb_table, pos_enc, act_dtype)
    bias = mask_to_bias(src_mask)
    for pp in prepped_layers:
        x = encoder_layer_ref(x, bias, pp, n_head)
        x = x.astype(act_dtype)       # mirror the kernel's bf16 storage format
    return x


# ----------------------------------------------------------------------------
if __name__ == "__main__":
    enc_vocab_size = 100
    max_len = 16
    d_model = 32
    ffn_hidden = 64
    n_head = 4
    n_layers = 2
    B, S = 2, 8

    key = jax.random.PRNGKey(0)
    k_params, k_tok = jax.random.split(key)

    emb_table, raw_layers = init_encoder_params(
        k_params, enc_vocab_size, d_model, ffn_hidden, n_layers)
    prepped_layers = [prep_layer_params(p, n_head) for p in raw_layers]
    pos_enc = sinusoidal_encoding(max_len, d_model)

    tokens = jax.random.randint(k_tok, (B, S), 2, enc_vocab_size)
    lengths = jnp.array([8, 6])
    # src_mask: (B, 1, S), 1 = valid key position, 0 = padding
    src_mask = (jnp.arange(S)[None, :] < lengths[:, None]
                ).astype(jnp.float32)[:, None, :]

    out = encoder_forward(tokens, src_mask, emb_table, pos_enc,
                          prepped_layers, n_head)
    out = jax.block_until_ready(out)

    ref = encoder_ref(tokens, src_mask, emb_table, pos_enc,
                      prepped_layers, n_head)
    np.testing.assert_allclose(np.asarray(out, dtype=np.float32),
                               np.asarray(ref, dtype=np.float32),
                               rtol=1e-2, atol=1e-2)

    print("KERNEL_OK")
</pallas_src>

<mosaic_0001>
module attributes {stable_mosaic.version = 11 : i64} {
  func.func @_encoder_layer_kernel(%arg0: i32, %arg1: i32, %arg2: memref<1x8x32xbf16, #tpu.memory_space<vmem>>, %arg3: memref<1x8x32xbf16, #tpu.memory_space<vmem>>, %arg4: memref<1x1x8xf32, #tpu.memory_space<vmem>>, %arg5: memref<32x32xbf16, #tpu.memory_space<vmem>>, %arg6: memref<1x32xf32, #tpu.memory_space<vmem>>, %arg7: memref<32x64xbf16, #tpu.memory_space<vmem>>, %arg8: memref<1x64xf32, #tpu.memory_space<vmem>>, %arg9: memref<32x32xbf16, #tpu.memory_space<vmem>>, %arg10: memref<1x32xf32, #tpu.memory_space<vmem>>, %arg11: memref<1x32xf32, #tpu.memory_space<vmem>>, %arg12: memref<1x32xf32, #tpu.memory_space<vmem>>, %arg13: memref<32x64xbf16, #tpu.memory_space<vmem>>, %arg14: memref<1x64xf32, #tpu.memory_space<vmem>>, %arg15: memref<64x32xbf16, #tpu.memory_space<vmem>>, %arg16: memref<1x32xf32, #tpu.memory_space<vmem>>, %arg17: memref<1x32xf32, #tpu.memory_space<vmem>>, %arg18: memref<1x32xf32, #tpu.memory_space<vmem>>, %arg19: memref<1x8x32xbf16, #tpu.memory_space<vmem>>, %arg20: memref<1x8x64xbf16, #tpu.memory_space<vmem>>, %arg21: memref<1x8x32xbf16, #tpu.memory_space<vmem>>) attributes {dimension_semantics = [#tpu.dimension_semantics<parallel>, #tpu.dimension_semantics<arbitrary>], iteration_bounds = array<i64: 2, 1>, scalar_prefetch = 0 : i64, scratch_operands = 2 : i64, tpu.core_type = #tpu.core_type<tc>, window_params = [{transform_indices = @transform_0, window_bounds = array<i64: 1, 8, 32>}, {transform_indices = @transform_1, window_bounds = array<i64: 1, 8, 32>}, {transform_indices = @transform_2, window_bounds = array<i64: 1, 1, 8>}, {pipeline_mode = #tpu.pipeline_mode<synchronous>, transform_indices = @transform_3, window_bounds = array<i64: 32, 32>}, {pipeline_mode = #tpu.pipeline_mode<synchronous>, transform_indices = @transform_4, window_bounds = array<i64: 1, 32>}, {pipeline_mode = #tpu.pipeline_mode<synchronous>, transform_indices = @transform_5, window_bounds = array<i64: 32, 64>}, {pipeline_mode = #tpu.pipeline_mode<synchronous>, transform_indices = @transform_6, window_bounds = array<i64: 1, 64>}, {pipeline_mode = #tpu.pipeline_mode<synchronous>, transform_indices = @transform_7, window_bounds = array<i64: 32, 32>}, {pipeline_mode = #tpu.pipeline_mode<synchronous>, transform_indices = @transform_8, window_bounds = array<i64: 1, 32>}, {pipeline_mode = #tpu.pipeline_mode<synchronous>, transform_indices = @transform_9, window_bounds = array<i64: 1, 32>}, {pipeline_mode = #tpu.pipeline_mode<synchronous>, transform_indices = @transform_10, window_bounds = array<i64: 1, 32>}, {pipeline_mode = #tpu.pipeline_mode<synchronous>, transform_indices = @transform_11, window_bounds = array<i64: 32, 64>}, {pipeline_mode = #tpu.pipeline_mode<synchronous>, transform_indices = @transform_12, window_bounds = array<i64: 1, 64>}, {pipeline_mode = #tpu.pipeline_mode<synchronous>, transform_indices = @transform_13, window_bounds = array<i64: 64, 32>}, {pipeline_mode = #tpu.pipeline_mode<synchronous>, transform_indices = @transform_14, window_bounds = array<i64: 1, 32>}, {pipeline_mode = #tpu.pipeline_mode<synchronous>, transform_indices = @transform_15, window_bounds = array<i64: 1, 32>}, {pipeline_mode = #tpu.pipeline_mode<synchronous>, transform_indices = @transform_16, window_bounds = array<i64: 1, 32>}, {transform_indices = @transform_17, window_bounds = array<i64: 1, 8, 32>}]} {
    %c0_i32 = arith.constant 0 : i32
    %0 = arith.cmpi eq, %arg1, %c0_i32 : i32
    %1 = arith.extui %0 : i1 to i32
    %c0_i32_0 = arith.constant 0 : i32
    %2 = arith.cmpi ne, %1, %c0_i32_0 : i32
    scf.if %2 {
      %c0_78 = arith.constant 0 : index
      %c0_79 = arith.constant 0 : index
      %c0_80 = arith.constant 0 : index
      %169 = vector.load %arg3[%c0_78, %c0_79, %c0_80] : memref<1x8x32xbf16, #tpu.memory_space<vmem>>, vector<1x8x32xbf16>
      %170 = vector.shape_cast %169 : vector<1x8x32xbf16> to vector<8x32xbf16>
      %c0_81 = arith.constant 0 : index
      %c0_82 = arith.constant 0 : index
      %171 = vector.load %arg7[%c0_81, %c0_82] : memref<32x64xbf16, #tpu.memory_space<vmem>>, vector<32x64xbf16>
      %cst_83 = arith.constant dense<0.000000e+00> : vector<8x64xf32>
      %172 = tpu.matmul %170, %171, %cst_83 {dimension_numbers = #tpu.dot_dimension_numbers<[1], [0], [0], [1], [0, 0, 1, 1], [], []>} : vector<8x32xbf16>, vector<32x64xbf16>, vector<8x64xf32> -> vector<8x64xf32>
      %c0_84 = arith.constant 0 : index
      %c0_85 = arith.constant 0 : index
      %173 = vector.load %arg8[%c0_84, %c0_85] : memref<1x64xf32, #tpu.memory_space<vmem>>, vector<1x64xf32>
      %174 = vector.broadcast %173 : vector<1x64xf32> to vector<8x64xf32>
      %175 = arith.addf %172, %174 : vector<8x64xf32>
      %176 = vector.shape_cast %175 : vector<8x64xf32> to vector<1x8x64xf32>
      %177 = arith.truncf %176 : vector<1x8x64xf32> to vector<1x8x64xbf16>
      %c0_86 = arith.constant 0 : index
      %c0_87 = arith.constant 0 : index
      %c0_88 = arith.constant 0 : index
      %178 = vector.load %arg20[%c0_86, %c0_87, %c0_88] : memref<1x8x64xbf16, #tpu.memory_space<vmem>>, vector<1x8x64xbf16>
      tpu.vector_store %arg20[%c0_86, %c0_87, %c0_88], %177 {strides = array<i32>} : memref<1x8x64xbf16, #tpu.memory_space<vmem>>, vector<1x8x64xbf16>,
    } else {
    }
    %c0 = arith.constant 0 : index
    %c0_1 = arith.constant 0 : index
    %c0_2 = arith.constant 0 : index
    %3 = vector.load %arg2[%c0, %c0_1, %c0_2] : memref<1x8x32xbf16, #tpu.memory_space<vmem>>, vector<1x8x32xbf16>
    %4 = vector.shape_cast %3 : vector<1x8x32xbf16> to vector<8x32xbf16>
    %5 = arith.extf %4 : vector<8x32xbf16> to vector<8x32xf32>
    %c0_3 = arith.constant 0 : index
    %c0_4 = arith.constant 0 : index
    %6 = vector.load %arg5[%c0_3, %c0_4] : memref<32x32xbf16, #tpu.memory_space<vmem>>, vector<32x32xbf16>
    %cst = arith.constant dense<0.000000e+00> : vector<8x32xf32>
    %7 = tpu.matmul %4, %6, %cst {dimension_numbers = #tpu.dot_dimension_numbers<[1], [0], [0], [1], [0, 0, 1, 1], [], []>} : vector<8x32xbf16>, vector<32x32xbf16>, vector<8x32xf32> -> vector<8x32xf32>
    %c0_5 = arith.constant 0 : index
    %c0_6 = arith.constant 0 : index
    %8 = vector.load %arg6[%c0_5, %c0_6] : memref<1x32xf32, #tpu.memory_space<vmem>>, vector<1x32xf32>
    %9 = vector.broadcast %8 : vector<1x32xf32> to vector<8x32xf32>
    %10 = arith.addf %7, %9 : vector<8x32xf32>
    %11 = vector.shape_cast %10 : vector<8x32xf32> to vector<1x8x32xf32>
    %12 = arith.truncf %11 : vector<1x8x32xf32> to vector<1x8x32xbf16>
    %c0_7 = arith.constant 0 : index
    %c0_8 = arith.constant 0 : index
    %c0_9 = arith.constant 0 : index
    %13 = vector.load %arg4[%c0_7, %c0_8, %c0_9] : memref<1x1x8xf32, #tpu.memory_space<vmem>>, vector<1x1x8xf32>
    %c0_10 = arith.constant 0 : index
    %c0_11 = arith.constant 0 : index
    %c0_12 = arith.constant 0 : index
    %14 = vector.load %arg20[%c0_10, %c0_11, %c0_12] : memref<1x8x64xbf16, #tpu.memory_space<vmem>>, vector<1x8x64xbf16>
    %15 = vector.extract_strided_slice %12 {offsets = [0, 0, 0], sizes = [1, 8, 8], strides = [1, 1, 1]} : vector<1x8x32xbf16> to vector<1x8x8xbf16>
    %16 = vector.extract_strided_slice %14 {offsets = [0, 0, 0], sizes = [1, 8, 8], strides = [1, 1, 1]} : vector<1x8x64xbf16> to vector<1x8x8xbf16>
    %17 = vector.extract_strided_slice %14 {offsets = [0, 0, 32], sizes = [1, 8, 8], strides = [1, 1, 1]} : vector<1x8x64xbf16> to vector<1x8x8xbf16>
    "tpu.trace_start"() <{level = 10 : i32, message = "bqd,bkd->bqk"}> : () -> ()
    %cst_13 = arith.constant dense<0.000000e+00> : vector<1x8x8xf32>
    %18 = tpu.matmul %15, %16, %cst_13 {dimension_numbers = #tpu.dot_dimension_numbers<[2], [2], [1], [1], [0, 0, 0, 1, 1, 1], [0], [0]>} : vector<1x8x8xbf16>, vector<1x8x8xbf16>, vector<1x8x8xf32> -> vector<1x8x8xf32>
    "tpu.trace_stop"() : () -> ()
    %19 = vector.broadcast %13 : vector<1x1x8xf32> to vector<1x8x8xf32>
    %20 = arith.addf %18, %19 : vector<1x8x8xf32>
    %cst_14 = arith.constant dense<0xFF800000> : vector<1x8xf32>
    %21 = vector.multi_reduction <maximumf>, %20, %cst_14 [2] : vector<1x8x8xf32> to vector<1x8xf32>
    %22 = vector.shape_cast %21 : vector<1x8xf32> to vector<1x8x1xf32>
    %23 = vector.broadcast %22 : vector<1x8x1xf32> to vector<1x8x8xf32>
    %24 = arith.subf %20, %23 : vector<1x8x8xf32>
    %25 = math.exp %24 : vector<1x8x8xf32>
    %cst_15 = arith.constant dense<0.000000e+00> : vector<1x8xf32>
    %26 = vector.multi_reduction <add>, %25, %cst_15 [2] : vector<1x8x8xf32> to vector<1x8xf32>
    %27 = vector.shape_cast %26 : vector<1x8xf32> to vector<1x8x1xf32>
    %28 = tpu.reciprocal %27 {approx = true} : vector<1x8x1xf32> -> vector<1x8x1xf32>
    %29 = vector.broadcast %28 : vector<1x8x1xf32> to vector<1x8x8xf32>
    %30 = arith.mulf %25, %29 : vector<1x8x8xf32>
    %31 = arith.truncf %30 : vector<1x8x8xf32> to vector<1x8x8xbf16>
    "tpu.trace_start"() <{level = 10 : i32, message = "bqk,bkd->bqd"}> : () -> ()
    %cst_16 = arith.constant dense<0.000000e+00> : vector<1x8x8xf32>
    %32 = tpu.matmul %31, %17, %cst_16 {dimension_numbers = #tpu.dot_dimension_numbers<[2], [1], [1], [2], [0, 0, 0, 1, 1, 2], [0], [0]>} : vector<1x8x8xbf16>, vector<1x8x8xbf16>, vector<1x8x8xf32> -> vector<1x8x8xf32>
    "tpu.trace_stop"() : () -> ()
    %33 = arith.truncf %32 : vector<1x8x8xf32> to vector<1x8x8xbf16>
    %c0_17 = arith.constant 0 : index
    %c0_18 = arith.constant 0 : index
    %c0_19 = arith.constant 0 : index
    %34 = vector.load %arg21[%c0_17, %c0_18, %c0_19] : memref<1x8x32xbf16, #tpu.memory_space<vmem>>, vector<1x8x8xbf16>
    tpu.vector_store %arg21[%c0_17, %c0_18, %c0_19], %33 {strides = array<i32>} : memref<1x8x32xbf16, #tpu.memory_space<vmem>>, vector<1x8x8xbf16>,
    %35 = vector.extract_strided_slice %12 {offsets = [0, 0, 8], sizes = [1, 8, 8], strides = [1, 1, 1]} : vector<1x8x32xbf16> to vector<1x8x8xbf16>
    %36 = vector.extract_strided_slice %14 {offsets = [0, 0, 8], sizes = [1, 8, 8], strides = [1, 1, 1]} : vector<1x8x64xbf16> to vector<1x8x8xbf16>
    %37 = vector.extract_strided_slice %14 {offsets = [0, 0, 40], sizes = [1, 8, 8], strides = [1, 1, 1]} : vector<1x8x64xbf16> to vector<1x8x8xbf16>
    "tpu.trace_start"() <{level = 10 : i32, message = "bqd,bkd->bqk"}> : () -> ()
    %cst_20 = arith.constant dense<0.000000e+00> : vector<1x8x8xf32>
    %38 = tpu.matmul %35, %36, %cst_20 {dimension_numbers = #tpu.dot_dimension_numbers<[2], [2], [1], [1], [0, 0, 0, 1, 1, 1], [0], [0]>} : vector<1x8x8xbf16>, vector<1x8x8xbf16>, vector<1x8x8xf32> -> vector<1x8x8xf32>
    "tpu.trace_stop"() : () -> ()
    %39 = vector.broadcast %13 : vector<1x1x8xf32> to vector<1x8x8xf32>
    %40 = arith.addf %38, %39 : vector<1x8x8xf32>
    %cst_21 = arith.constant dense<0xFF800000> : vector<1x8xf32>
    %41 = vector.multi_reduction <maximumf>, %40, %cst_21 [2] : vector<1x8x8xf32> to vector<1x8xf32>
    %42 = vector.shape_cast %41 : vector<1x8xf32> to vector<1x8x1xf32>
    %43 = vector.broadcast %42 : vector<1x8x1xf32> to vector<1x8x8xf32>
    %44 = arith.subf %40, %43 : vector<1x8x8xf32>
    %45 = math.exp %44 : vector<1x8x8xf32>
    %cst_22 = arith.constant dense<0.000000e+00> : vector<1x8xf32>
    %46 = vector.multi_reduction <add>, %45, %cst_22 [2] : vector<1x8x8xf32> to vector<1x8xf32>
    %47 = vector.shape_cast %46 : vector<1x8xf32> to vector<1x8x1xf32>
    %48 = tpu.reciprocal %47 {approx = true} : vector<1x8x1xf32> -> vector<1x8x1xf32>
    %49 = vector.broadcast %48 : vector<1x8x1xf32> to vector<1x8x8xf32>
    %50 = arith.mulf %45, %49 : vector<1x8x8xf32>
    %51 = arith.truncf %50 : vector<1x8x8xf32> to vector<1x8x8xbf16>
    "tpu.trace_start"() <{level = 10 : i32, message = "bqk,bkd->bqd"}> : () -> ()
    %cst_23 = arith.constant dense<0.000000e+00> : vector<1x8x8xf32>
    %52 = tpu.matmul %51, %37, %cst_23 {dimension_numbers = #tpu.dot_dimension_numbers<[2], [1], [1], [2], [0, 0, 0, 1, 1, 2], [0], [0]>} : vector<1x8x8xbf16>, vector<1x8x8xbf16>, vector<1x8x8xf32> -> vector<1x8x8xf32>
    "tpu.trace_stop"() : () -> ()
    %53 = arith.truncf %52 : vector<1x8x8xf32> to vector<1x8x8xbf16>
    %c0_24 = arith.constant 0 : index
    %c0_25 = arith.constant 0 : index
    %c8 = arith.constant 8 : index
    %54 = vector.load %arg21[%c0_24, %c0_25, %c8] : memref<1x8x32xbf16, #tpu.memory_space<vmem>>, vector<1x8x8xbf16>
    tpu.vector_store %arg21[%c0_24, %c0_25, %c8], %53 {strides = array<i32>} : memref<1x8x32xbf16, #tpu.memory_space<vmem>>, vector<1x8x8xbf16>,
    %55 = vector.extract_strided_slice %12 {offsets = [0, 0, 16], sizes = [1, 8, 8], strides = [1, 1, 1]} : vector<1x8x32xbf16> to vector<1x8x8xbf16>
    %56 = vector.extract_strided_slice %14 {offsets = [0, 0, 16], sizes = [1, 8, 8], strides = [1, 1, 1]} : vector<1x8x64xbf16> to vector<1x8x8xbf16>
    %57 = vector.extract_strided_slice %14 {offsets = [0, 0, 48], sizes = [1, 8, 8], strides = [1, 1, 1]} : vector<1x8x64xbf16> to vector<1x8x8xbf16>
    "tpu.trace_start"() <{level = 10 : i32, message = "bqd,bkd->bqk"}> : () -> ()
    %cst_26 = arith.constant dense<0.000000e+00> : vector<1x8x8xf32>
    %58 = tpu.matmul %55, %56, %cst_26 {dimension_numbers = #tpu.dot_dimension_numbers<[2], [2], [1], [1], [0, 0, 0, 1, 1, 1], [0], [0]>} : vector<1x8x8xbf16>, vector<1x8x8xbf16>, vector<1x8x8xf32> -> vector<1x8x8xf32>
    "tpu.trace_stop"() : () -> ()
    %59 = vector.broadcast %13 : vector<1x1x8xf32> to vector<1x8x8xf32>
    %60 = arith.addf %58, %59 : vector<1x8x8xf32>
    %cst_27 = arith.constant dense<0xFF800000> : vector<1x8xf32>
    %61 = vector.multi_reduction <maximumf>, %60, %cst_27 [2] : vector<1x8x8xf32> to vector<1x8xf32>
    %62 = vector.shape_cast %61 : vector<1x8xf32> to vector<1x8x1xf32>
    %63 = vector.broadcast %62 : vector<1x8x1xf32> to vector<1x8x8xf32>
    %64 = arith.subf %60, %63 : vector<1x8x8xf32>
    %65 = math.exp %64 : vector<1x8x8xf32>
    %cst_28 = arith.constant dense<0.000000e+00> : vector<1x8xf32>
    %66 = vector.multi_reduction <add>, %65, %cst_28 [2] : vector<1x8x8xf32> to vector<1x8xf32>
    %67 = vector.shape_cast %66 : vector<1x8xf32> to vector<1x8x1xf32>
    %68 = tpu.reciprocal %67 {approx = true} : vector<1x8x1xf32> -> vector<1x8x1xf32>
    %69 = vector.broadcast %68 : vector<1x8x1xf32> to vector<1x8x8xf32>
    %70 = arith.mulf %65, %69 : vector<1x8x8xf32>
    %71 = arith.truncf %70 : vector<1x8x8xf32> to vector<1x8x8xbf16>
    "tpu.trace_start"() <{level = 10 : i32, message = "bqk,bkd->bqd"}> : () -> ()
    %cst_29 = arith.constant dense<0.000000e+00> : vector<1x8x8xf32>
    %72 = tpu.matmul %71, %57, %cst_29 {dimension_numbers = #tpu.dot_dimension_numbers<[2], [1], [1], [2], [0, 0, 0, 1, 1, 2], [0], [0]>} : vector<1x8x8xbf16>, vector<1x8x8xbf16>, vector<1x8x8xf32> -> vector<1x8x8xf32>
    "tpu.trace_stop"() : () -> ()
    %73 = arith.truncf %72 : vector<1x8x8xf32> to vector<1x8x8xbf16>
    %c0_30 = arith.constant 0 : index
    %c0_31 = arith.constant 0 : index
    %c16 = arith.constant 16 : index
    %74 = vector.load %arg21[%c0_30, %c0_31, %c16] : memref<1x8x32xbf16, #tpu.memory_space<vmem>>, vector<1x8x8xbf16>
    tpu.vector_store %arg21[%c0_30, %c0_31, %c16], %73 {strides = array<i32>} : memref<1x8x32xbf16, #tpu.memory_space<vmem>>, vector<1x8x8xbf16>,
    %75 = vector.extract_strided_slice %12 {offsets = [0, 0, 24], sizes = [1, 8, 8], strides = [1, 1, 1]} : vector<1x8x32xbf16> to vector<1x8x8xbf16>
    %76 = vector.extract_strided_slice %14 {offsets = [0, 0, 24], sizes = [1, 8, 8], strides = [1, 1, 1]} : vector<1x8x64xbf16> to vector<1x8x8xbf16>
    %77 = vector.extract_strided_slice %14 {offsets = [0, 0, 56], sizes = [1, 8, 8], strides = [1, 1, 1]} : vector<1x8x64xbf16> to vector<1x8x8xbf16>
    "tpu.trace_start"() <{level = 10 : i32, message = "bqd,bkd->bqk"}> : () -> ()
    %cst_32 = arith.constant dense<0.000000e+00> : vector<1x8x8xf32>
    %78 = tpu.matmul %75, %76, %cst_32 {dimension_numbers = #tpu.dot_dimension_numbers<[2], [2], [1], [1], [0, 0, 0, 1, 1, 1], [0], [0]>} : vector<1x8x8xbf16>, vector<1x8x8xbf16>, vector<1x8x8xf32> -> vector<1x8x8xf32>
    "tpu.trace_stop"() : () -> ()
    %79 = vector.broadcast %13 : vector<1x1x8xf32> to vector<1x8x8xf32>
    %80 = arith.addf %78, %79 : vector<1x8x8xf32>
    %cst_33 = arith.constant dense<0xFF800000> : vector<1x8xf32>
    %81 = vector.multi_reduction <maximumf>, %80, %cst_33 [2] : vector<1x8x8xf32> to vector<1x8xf32>
    %82 = vector.shape_cast %81 : vector<1x8xf32> to vector<1x8x1xf32>
    %83 = vector.broadcast %82 : vector<1x8x1xf32> to vector<1x8x8xf32>
    %84 = arith.subf %80, %83 : vector<1x8x8xf32>
    %85 = math.exp %84 : vector<1x8x8xf32>
    %cst_34 = arith.constant dense<0.000000e+00> : vector<1x8xf32>
    %86 = vector.multi_reduction <add>, %85, %cst_34 [2] : vector<1x8x8xf32> to vector<1x8xf32>
    %87 = vector.shape_cast %86 : vector<1x8xf32> to vector<1x8x1xf32>
    %88 = tpu.reciprocal %87 {approx = true} : vector<1x8x1xf32> -> vector<1x8x1xf32>
    %89 = vector.broadcast %88 : vector<1x8x1xf32> to vector<1x8x8xf32>
    %90 = arith.mulf %85, %89 : vector<1x8x8xf32>
    %91 = arith.truncf %90 : vector<1x8x8xf32> to vector<1x8x8xbf16>
    "tpu.trace_start"() <{level = 10 : i32, message = "bqk,bkd->bqd"}> : () -> ()
    %cst_35 = arith.constant dense<0.000000e+00> : vector<1x8x8xf32>
    %92 = tpu.matmul %91, %77, %cst_35 {dimension_numbers = #tpu.dot_dimension_numbers<[2], [1], [1], [2], [0, 0, 0, 1, 1, 2], [0], [0]>} : vector<1x8x8xbf16>, vector<1x8x8xbf16>, vector<1x8x8xf32> -> vector<1x8x8xf32>
    "tpu.trace_stop"() : () -> ()
    %93 = arith.truncf %92 : vector<1x8x8xf32> to vector<1x8x8xbf16>
    %c0_36 = arith.constant 0 : index
    %c0_37 = arith.constant 0 : index
    %c24 = arith.constant 24 : index
    %94 = vector.load %arg21[%c0_36, %c0_37, %c24] : memref<1x8x32xbf16, #tpu.memory_space<vmem>>, vector<1x8x8xbf16>
    tpu.vector_store %arg21[%c0_36, %c0_37, %c24], %93 {strides = array<i32>} : memref<1x8x32xbf16, #tpu.memory_space<vmem>>, vector<1x8x8xbf16>,
    %c0_38 = arith.constant 0 : index
    %c0_39 = arith.constant 0 : index
    %c0_40 = arith.constant 0 : index
    %95 = vector.load %arg21[%c0_38, %c0_39, %c0_40] : memref<1x8x32xbf16, #tpu.memory_space<vmem>>, vector<1x8x32xbf16>
    %96 = vector.shape_cast %95 : vector<1x8x32xbf16> to vector<8x32xbf16>
    %c0_41 = arith.constant 0 : index
    %c0_42 = arith.constant 0 : index
    %97 = vector.load %arg9[%c0_41, %c0_42] : memref<32x32xbf16, #tpu.memory_space<vmem>>, vector<32x32xbf16>
    %cst_43 = arith.constant dense<0.000000e+00> : vector<8x32xf32>
    %98 = tpu.matmul %96, %97, %cst_43 {dimension_numbers = #tpu.dot_dimension_numbers<[1], [0], [0], [1], [0, 0, 1, 1], [], []>} : vector<8x32xbf16>, vector<32x32xbf16>, vector<8x32xf32> -> vector<8x32xf32>
    %c0_44 = arith.constant 0 : index
    %c0_45 = arith.constant 0 : index
    %99 = vector.load %arg10[%c0_44, %c0_45] : memref<1x32xf32, #tpu.memory_space<vmem>>, vector<1x32xf32>
    %100 = vector.broadcast %99 : vector<1x32xf32> to vector<8x32xf32>
    %101 = arith.addf %98, %100 : vector<8x32xf32>
    %102 = arith.addf %5, %101 : vector<8x32xf32>
    %cst_46 = arith.constant dense<0.000000e+00> : vector<8xf32>
    %103 = vector.multi_reduction <add>, %102, %cst_46 [1] : vector<8x32xf32> to vector<8xf32>
    %104 = vector.shape_cast %103 : vector<8xf32> to vector<8x1xf32>
    %cst_47 = arith.constant 3.200000e+01 : f32
    %105 = vector.broadcast %cst_47 : f32 to vector<8x1xf32>
    %106 = arith.divf %104, %105 : vector<8x1xf32>
    %107 = vector.broadcast %106 : vector<8x1xf32> to vector<8x32xf32>
    %108 = arith.subf %102, %107 : vector<8x32xf32>
    %109 = arith.mulf %108, %108 : vector<8x32xf32>
    %cst_48 = arith.constant dense<0.000000e+00> : vector<8xf32>
    %110 = vector.multi_reduction <add>, %109, %cst_48 [1] : vector<8x32xf32> to vector<8xf32>
    %111 = vector.shape_cast %110 : vector<8xf32> to vector<8x1xf32>
    %cst_49 = arith.constant 3.200000e+01 : f32
    %112 = vector.broadcast %cst_49 : f32 to vector<8x1xf32>
    %113 = arith.divf %111, %112 : vector<8x1xf32>
    %114 = vector.broadcast %106 : vector<8x1xf32> to vector<8x32xf32>
    %115 = arith.subf %102, %114 : vector<8x32xf32>
    %cst_50 = arith.constant 9.99999996E-13 : f32
    %116 = vector.broadcast %cst_50 : f32 to vector<8x1xf32>
    %117 = arith.addf %113, %116 : vector<8x1xf32>
    %118 = math.rsqrt %117 : vector<8x1xf32>
    %119 = vector.broadcast %118 : vector<8x1xf32> to vector<8x32xf32>
    %120 = arith.mulf %115, %119 : vector<8x32xf32>
    %c0_51 = arith.constant 0 : index
    %c0_52 = arith.constant 0 : index
    %121 = vector.load %arg11[%c0_51, %c0_52] : memref<1x32xf32, #tpu.memory_space<vmem>>, vector<1x32xf32>
    %122 = vector.broadcast %121 : vector<1x32xf32> to vector<8x32xf32>
    %123 = arith.mulf %122, %120 : vector<8x32xf32>
    %c0_53 = arith.constant 0 : index
    %c0_54 = arith.constant 0 : index
    %124 = vector.load %arg12[%c0_53, %c0_54] : memref<1x32xf32, #tpu.memory_space<vmem>>, vector<1x32xf32>
    %125 = vector.broadcast %124 : vector<1x32xf32> to vector<8x32xf32>
    %126 = arith.addf %123, %125 : vector<8x32xf32>
    %127 = arith.truncf %126 : vector<8x32xf32> to vector<8x32xbf16>
    %c0_55 = arith.constant 0 : index
    %c0_56 = arith.constant 0 : index
    %128 = vector.load %arg13[%c0_55, %c0_56] : memref<32x64xbf16, #tpu.memory_space<vmem>>, vector<32x64xbf16>
    %cst_57 = arith.constant dense<0.000000e+00> : vector<8x64xf32>
    %129 = tpu.matmul %127, %128, %cst_57 {dimension_numbers = #tpu.dot_dimension_numbers<[1], [0], [0], [1], [0, 0, 1, 1], [], []>} : vector<8x32xbf16>, vector<32x64xbf16>, vector<8x64xf32> -> vector<8x64xf32>
    %c0_58 = arith.constant 0 : index
    %c0_59 = arith.constant 0 : index
    %130 = vector.load %arg14[%c0_58, %c0_59] : memref<1x64xf32, #tpu.memory_space<vmem>>, vector<1x64xf32>
    %131 = vector.broadcast %130 : vector<1x64xf32> to vector<8x64xf32>
    %132 = arith.addf %129, %131 : vector<8x64xf32>
    %cst_60 = arith.constant 0.000000e+00 : f32
    %133 = vector.broadcast %cst_60 : f32 to vector<8x64xf32>
    %134 = arith.maximumf %132, %133 : vector<8x64xf32>
    %135 = arith.truncf %134 : vector<8x64xf32> to vector<8x64xbf16>
    %c0_61 = arith.constant 0 : index
    %c0_62 = arith.constant 0 : index
    %136 = vector.load %arg15[%c0_61, %c0_62] : memref<64x32xbf16, #tpu.memory_space<vmem>>, vector<64x32xbf16>
    %cst_63 = arith.constant dense<0.000000e+00> : vector<8x32xf32>
    %137 = tpu.matmul %135, %136, %cst_63 {dimension_numbers = #tpu.dot_dimension_numbers<[1], [0], [0], [1], [0, 0, 1, 1], [], []>} : vector<8x64xbf16>, vector<64x32xbf16>, vector<8x32xf32> -> vector<8x32xf32>
    %c0_64 = arith.constant 0 : index
    %c0_65 = arith.constant 0 : index
    %138 = vector.load %arg16[%c0_64, %c0_65] : memref<1x32xf32, #tpu.memory_space<vmem>>, vector<1x32xf32>
    %139 = vector.broadcast %138 : vector<1x32xf32> to vector<8x32xf32>
    %140 = arith.addf %137, %139 : vector<8x32xf32>
    %141 = arith.addf %126, %140 : vector<8x32xf32>
    %cst_66 = arith.constant dense<0.000000e+00> : vector<8xf32>
    %142 = vector.multi_reduction <add>, %141, %cst_66 [1] : vector<8x32xf32> to vector<8xf32>
    %143 = vector.shape_cast %142 : vector<8xf32> to vector<8x1xf32>
    %cst_67 = arith.constant 3.200000e+01 : f32
    %144 = vector.broadcast %cst_67 : f32 to vector<8x1xf32>
    %145 = arith.divf %143, %144 : vector<8x1xf32>
    %146 = vector.broadcast %145 : vector<8x1xf32> to vector<8x32xf32>
    %147 = arith.subf %141, %146 : vector<8x32xf32>
    %148 = arith.mulf %147, %147 : vector<8x32xf32>
    %cst_68 = arith.constant dense<0.000000e+00> : vector<8xf32>
    %149 = vector.multi_reduction <add>, %148, %cst_68 [1] : vector<8x32xf32> to vector<8xf32>
    %150 = vector.shape_cast %149 : vector<8xf32> to vector<8x1xf32>
    %cst_69 = arith.constant 3.200000e+01 : f32
    %151 = vector.broadcast %cst_69 : f32 to vector<8x1xf32>
    %152 = arith.divf %150, %151 : vector<8x1xf32>
    %153 = vector.broadcast %145 : vector<8x1xf32> to vector<8x32xf32>
    %154 = arith.subf %141, %153 : vector<8x32xf32>
    %cst_70 = arith.constant 9.99999996E-13 : f32
    %155 = vector.broadcast %cst_70 : f32 to vector<8x1xf32>
    %156 = arith.addf %152, %155 : vector<8x1xf32>
    %157 = math.rsqrt %156 : vector<8x1xf32>
    %158 = vector.broadcast %157 : vector<8x1xf32> to vector<8x32xf32>
    %159 = arith.mulf %154, %158 : vector<8x32xf32>
    %c0_71 = arith.constant 0 : index
    %c0_72 = arith.constant 0 : index
    %160 = vector.load %arg17[%c0_71, %c0_72] : memref<1x32xf32, #tpu.memory_space<vmem>>, vector<1x32xf32>
    %161 = vector.broadcast %160 : vector<1x32xf32> to vector<8x32xf32>
    %162 = arith.mulf %161, %159 : vector<8x32xf32>
    %c0_73 = arith.constant 0 : index
    %c0_74 = arith.constant 0 : index
    %163 = vector.load %arg18[%c0_73, %c0_74] : memref<1x32xf32, #tpu.memory_space<vmem>>, vector<1x32xf32>
    %164 = vector.broadcast %163 : vector<1x32xf32> to vector<8x32xf32>
    %165 = arith.addf %162, %164 : vector<8x32xf32>
    %166 = vector.shape_cast %165 : vector<8x32xf32> to vector<1x8x32xf32>
    %167 = arith.truncf %166 : vector<1x8x32xf32> to vector<1x8x32xbf16>
    %c0_75 = arith.constant 0 : index
    %c0_76 = arith.constant 0 : index
    %c0_77 = arith.constant 0 : index
    %168 = vector.load %arg19[%c0_75, %c0_76, %c0_77] : memref<1x8x32xbf16, #tpu.memory_space<vmem>>, vector<1x8x32xbf16>
    tpu.vector_store %arg19[%c0_75, %c0_76, %c0_77], %167 {strides = array<i32>} : memref<1x8x32xbf16, #tpu.memory_space<vmem>>, vector<1x8x32xbf16>,
    return
  }
  func.func @transform_0(%arg0: i32, %arg1: i32) -> (i32, i32, i32) {
    %c0_i32 = arith.constant 0 : i32
    %c0_i32_0 = arith.constant 0 : i32
    return %arg0, %arg1, %c0_i32 : i32, i32, i32
  }
  func.func @transform_1(%arg0: i32, %arg1: i32) -> (i32, i32, i32) {
    %c0_i32 = arith.constant 0 : i32
    %c0_i32_0 = arith.constant 0 : i32
    %c0_i32_1 = arith.constant 0 : i32
    return %arg0, %c0_i32, %c0_i32_0 : i32, i32, i32
  }
  func.func @transform_2(%arg0: i32, %arg1: i32) -> (i32, i32, i32) {
    %c0_i32 = arith.constant 0 : i32
    %c0_i32_0 = arith.constant 0 : i32
    %c0_i32_1 = arith.constant 0 : i32
    return %arg0, %c0_i32, %c0_i32_0 : i32, i32, i32
  }
  func.func @transform_3(%arg0: i32, %arg1: i32) -> (i32, i32) {
    %c0_i32 = arith.constant 0 : i32
    %c0_i32_0 = arith.constant 0 : i32
    %c0_i32_1 = arith.constant 0 : i32
    return %c0_i32, %c0_i32_0 : i32, i32
  }
  func.func @transform_4(%arg0: i32, %arg1: i32) -> (i32, i32) {
    %c0_i32 = arith.constant 0 : i32
    %c0_i32_0 = arith.constant 0 : i32
    %c0_i32_1 = arith.constant 0 : i32
    return %c0_i32, %c0_i32_0 : i32, i32
  }
  func.func @transform_5(%arg0: i32, %arg1: i32) -> (i32, i32) {
    %c0_i32 = arith.constant 0 : i32
    %c0_i32_0 = arith.constant 0 : i32
    %c0_i32_1 = arith.constant 0 : i32
    return %c0_i32, %c0_i32_0 : i32, i32
  }
  func.func @transform_6(%arg0: i32, %arg1: i32) -> (i32, i32) {
    %c0_i32 = arith.constant 0 : i32
    %c0_i32_0 = arith.constant 0 : i32
    %c0_i32_1 = arith.constant 0 : i32
    return %c0_i32, %c0_i32_0 : i32, i32
  }
  func.func @transform_7(%arg0: i32, %arg1: i32) -> (i32, i32) {
    %c0_i32 = arith.constant 0 : i32
    %c0_i32_0 = arith.constant 0 : i32
    %c0_i32_1 = arith.constant 0 : i32
    return %c0_i32, %c0_i32_0 : i32, i32
  }
  func.func @transform_8(%arg0: i32, %arg1: i32) -> (i32, i32) {
    %c0_i32 = arith.constant 0 : i32
    %c0_i32_0 = arith.constant 0 : i32
    %c0_i32_1 = arith.constant 0 : i32
    return %c0_i32, %c0_i32_0 : i32, i32
  }
  func.func @transform_9(%arg0: i32, %arg1: i32) -> (i32, i32) {
    %c0_i32 = arith.constant 0 : i32
    %c0_i32_0 = arith.constant 0 : i32
    %c0_i32_1 = arith.constant 0 : i32
    return %c0_i32, %c0_i32_0 : i32, i32
  }
  func.func @transform_10(%arg0: i32, %arg1: i32) -> (i32, i32) {
    %c0_i32 = arith.constant 0 : i32
    %c0_i32_0 = arith.constant 0 : i32
    %c0_i32_1 = arith.constant 0 : i32
    return %c0_i32, %c0_i32_0 : i32, i32
  }
  func.func @transform_11(%arg0: i32, %arg1: i32) -> (i32, i32) {
    %c0_i32 = arith.constant 0 : i32
    %c0_i32_0 = arith.constant 0 : i32
    %c0_i32_1 = arith.constant 0 : i32
    return %c0_i32, %c0_i32_0 : i32, i32
  }
  func.func @transform_12(%arg0: i32, %arg1: i32) -> (i32, i32) {
    %c0_i32 = arith.constant 0 : i32
    %c0_i32_0 = arith.constant 0 : i32
    %c0_i32_1 = arith.constant 0 : i32
    return %c0_i32, %c0_i32_0 : i32, i32
  }
  func.func @transform_13(%arg0: i32, %arg1: i32) -> (i32, i32) {
    %c0_i32 = arith.constant 0 : i32
    %c0_i32_0 = arith.constant 0 : i32
    %c0_i32_1 = arith.constant 0 : i32
    return %c0_i32, %c0_i32_0 : i32, i32
  }
  func.func @transform_14(%arg0: i32, %arg1: i32) -> (i32, i32) {
    %c0_i32 = arith.constant 0 : i32
    %c0_i32_0 = arith.constant 0 : i32
    %c0_i32_1 = arith.constant 0 : i32
    return %c0_i32, %c0_i32_0 : i32, i32
  }
  func.func @transform_15(%arg0: i32, %arg1: i32) -> (i32, i32) {
    %c0_i32 = arith.constant 0 : i32
    %c0_i32_0 = arith.constant 0 : i32
    %c0_i32_1 = arith.constant 0 : i32
    return %c0_i32, %c0_i32_0 : i32, i32
  }
  func.func @transform_16(%arg0: i32, %arg1: i32) -> (i32, i32) {
    %c0_i32 = arith.constant 0 : i32
    %c0_i32_0 = arith.constant 0 : i32
    %c0_i32_1 = arith.constant 0 : i32
    return %c0_i32, %c0_i32_0 : i32, i32
  }
  func.func @transform_17(%arg0: i32, %arg1: i32) -> (i32, i32, i32) {
    %c0_i32 = arith.constant 0 : i32
    %c0_i32_0 = arith.constant 0 : i32
    return %arg0, %arg1, %c0_i32 : i32, i32, i32
  }
}

</mosaic_0001>

<bundles_post_ra>
// kernel: tpu_custom_call.1
= control target key start
LH: loop header
LB: loop body
LE: loop exit
PB: predicated region body
PF: predicated region fallthrough
CT: control target
= control target key end

     0   :  { %s2963_s0 = inlined_call_operand.hbm [shape: bf16[2,8,32], index: 0, kind: input, shape index: {}]   ;;  %s2964_s1 = inlined_call_operand.hbm [shape: bf16[2,8,32], index: 1, kind: input, shape index: {}]   ;;  %s2965_s2 = inlined_call_operand.vmem [shape: f32[2,1,8], index: 2, kind: input, shape index: {}]   ;;  %s2966_s3 = inlined_call_operand.vmem [shape: bf16[32,32], index: 3, kind: input, shape index: {}]   ;;  %s2967_s4 = inlined_call_operand.hbm [shape: f32[1,32], index: 4, kind: input, shape index: {}]   ;;  %s2968_s5 = inlined_call_operand.vmem [shape: bf16[32,64], index: 5, kind: input, shape index: {}]   ;;  %s2969_s6 = inlined_call_operand.hbm [shape: f32[1,64], index: 6, kind: input, shape index: {}]   ;;  %s2970_s7 = inlined_call_operand.vmem [shape: bf16[32,32], index: 7, kind: input, shape index: {}]   ;;  %s2971_s8 = inlined_call_operand.hbm [shape: f32[1,32], index: 8, kind: input, shape index: {}]   ;;  %s2972_s9 = inlined_call_operand.hbm [shape: f32[1,32], index: 9, kind: input, shape index: {}]   ;;  %s2973_s10 = inlined_call_operand.vmem [shape: f32[1,32], index: 10, kind: input, shape index: {}]   ;;  %s2974_s11 = inlined_call_operand.vmem [shape: bf16[32,64], index: 11, kind: input, shape index: {}]   ;;  %s2975_s12 = inlined_call_operand.vmem [shape: f32[1,64], index: 12, kind: input, shape index: {}]   ;;  %s2976_s13 = inlined_call_operand.vmem [shape: bf16[64,32], index: 13, kind: input, shape index: {}]   ;;  %s2977_s14 = inlined_call_operand.vmem [shape: f32[1,32], index: 14, kind: input, shape index: {}]   ;;  %s2978_s15 = inlined_call_operand.vmem [shape: f32[1,32], index: 15, kind: input, shape index: {}]   ;;  %s2979_s16 = inlined_call_operand.vmem [shape: f32[1,32], index: 16, kind: input, shape index: {}]   ;;  %s2980_s17 = inlined_call_operand.hbm [shape: bf16[2,8,32], index: 17, kind: output, shape index: {}]  }
   0x1   :  { %2993 = sst [smem:[#allocation27_spill]] %s2963_s0 }
   0x2   :  { %2994 = sst [smem:[#allocation28_spill]] %s2964_s1 }
   0x3   :  { %2995 = sst [smem:[#allocation29_spill]] %s2967_s4 }
   0x4   :  { %2996 = sst [smem:[#allocation30_spill]] %s2969_s6 }
   0x5   :  { %2997 = sst [smem:[#allocation31_spill]] %s2971_s8 }
   0x6   :  { %2998 = sst [smem:[#allocation32_spill]] %s2972_s9 }
   0x7   :  { %2999 = sst [smem:[#allocation33_spill]] %s2973_s10 }
   0x8   :  { %3000 = sst [smem:[#allocation34_spill]] %s2975_s12 }
   0x9   :  { %3001 = sst [smem:[#allocation35_spill]] %s2976_s13 }
   0xa   :  { %3002 = sst [smem:[#allocation36_spill]] %s2977_s14 }
   0xb   :  { %3003 = sst [smem:[#allocation37_spill]] %s2978_s15 }
   0xc   :  { %3004 = sst [smem:[#allocation38_spill]] %s2979_s16 }
   0xd   :  { %3005 = sst [smem:[#allocation39_spill]] %s2980_s17 }
   0xe   :  { %22 = vsyncpa [#allocation5], 0 }
   0xf   :  { %24 = vsyncpa [#allocation5 + $0x1], 0 }
  0x10   :  { %25 = vsyncpa [#allocation8], 0 }
  0x11   :  { %27 = vsyncpa [#allocation8 + $0x1], 0 }
  0x12   :  { %28 = vsyncpa [#allocation11], 0 }
  0x13   :  { %29 = vsyncpa [#allocation14], 0 }
  0x14   :  { %30 = vsyncpa [#allocation6], 0 }
  0x15   :  { %32 = vsyncpa [#allocation6 + $0x1], 0  ;;  %s2481_s24 = smov 0   ;;  %s2483_s25 = smov 0  }
  0x16   :  { %s2485_s26 = smov 0   ;;  %s2487_s27 = smov 0  }
  0x17   :  { %s2489_s28 = smov 0   ;;  %s2491_s29 = smov 0  }
  0x18 LB: > { %3006 = sst [smem:[#allocation22_spill]] %s2358_s26  ;;  %s2512_s0 = sadd.s32 4294967295, %s2370_s29   ;;  %s2370_s29 = sphi %s2491_s29, %s38_s29   ;;  %s2366_s28 = sphi %s2489_s28, %s3048_s28   ;;  %s2362_s27 = sphi %s2487_s27, %s3047_s27   ;;  %s2358_s26 = sphi %s2485_s26, %s3051_s26   ;;  %s2354_s25 = sphi %s2483_s25, %s3050_s25   ;;  %s2350_s24 = sphi %s2481_s24, %s3049_s24  }
  0x19   : > { %3007 = sst [smem:[#allocation23_spill]] %s2366_s28  ;;  %p1758_p0 = scmp.ge.s32.totalorder %s2370_s29, 1 }
  0x1a   : > { %p2984_p1 = scmp.eq.s32.totalorder %s2512_s0, 0  ;;  %p457_p2 = scmp.lt.s32.totalorder %s2370_s29, 3 }
  0x1b   : > { %s2372_s18 = smov [#allocation9]   ;;  %s2373_s1 = smov [#allocation10]  }
  0x1c   : > { %p2517_p3 = pnand %p1758_p0, %p457_p2  ;;  %s473_s19 = sshll.u32 %s2372_s18, 4  ;;  %s474_s19 = int_to_ptr.vmem [resolvable:$true] %s473_s19 }
  0x1d   : > { %s487_s20 = sshll.u32 %s2373_s1, 4  ;;  %s2374_s22 = smov [#allocation12]   ;;  %s2530_s20 = int_to_ptr.vmem [resolvable:$true] %s487_s20 }
  0x1e   : > { %s3008_s30 = scalar_select %p2517_p3, 1, 0 }
  0x1f   : > { %p1969_p5 = pneg %p2517_p3  ;;  %s501_s23 = sshll.u32 %s2374_s22, 4  ;;  %s2532_s23 = int_to_ptr.vmem [resolvable:$true] %s501_s23 }
  0x20   : > { %s3010_s4 = sld [smem:[#allocation29_spill]] }
  0x21   : > { %p2526_p6 = pnand %p1969_p5, %p2984_p1 }
  0x23   : > { %p2542_p8 = pneg %p2526_p6 }
  0x26   : > { %s2100_s16 = scalar_lea.hbm %s3010_s4, 16 }
  0x27   : > { %p2101_p7 = scmp.ne.s32.totalorder %s3010_s4, %s2100_s16  ;;  %p2107_p11 = scmp.lt.u32.totalorder %s2100_s16, %s3010_s4 }
  0x29   : > { %p2103_p9 = pnand %p2542_p8, %p2101_p7 }
  0x2b   : > { %p2104_p10 = pneg %p2103_p9 }
  0x2d   : > { %p2109_p12 = pnand %p2107_p11, %p2104_p10 }
  0x2f   : > { %2112 = shalt.err (!%p2109_p12)
}
  0x30   : > { %s2113_s17 = scalar_lea.vmem %s474_s19, 16  ;;  %s2120_s14 = scalar_lea.vmem %s474_s19, 32 }
  0x31   : > { %p2114_p13 = scmp.ne.s32.totalorder %s474_s19, %s2113_s17  ;;  %p2121_p5 = scmp.lt.s32.totalorder %s474_s19, %s474_s19 }
  0x32   : > { %p2122_p4 = scmp.lt.s32.totalorder %s2120_s14, %s2113_s17 }
  0x33   : > { %p2116_p0 = pnand %p2114_p13, %p2542_p8 }
  0x34   : > { %p2123_p1 = por %p2122_p4, %p2121_p5 }
  0x35   : > { %p2117_p2 = pneg %p2116_p0 }
  0x37   : > { %p2124_p3 = pnand %p2123_p1, %p2117_p2 }
  0x39   : > { %2127 = shalt.err (!%p2124_p3)
}
  0x3a   : > { %1972 = dma.hbm_to_vmem [thread:$0]  (!%p2526_p6), %s3010_s4, 16, %s474_s19, [#allocation8]  }
  0x3b   : > { %s3012_s6 = sld [smem:[#allocation30_spill]] }
  0x41   : > { %s2128_s22 = scalar_lea.hbm %s3012_s6, 16 }
  0x42   : > { %p2129_p7 = scmp.ne.s32.totalorder %s3012_s6, %s2128_s22  ;;  %p2135_p1 = scmp.lt.u32.totalorder %s2128_s22, %s3012_s6 }
  0x44   : > { %p2131_p9 = pnand %p2129_p7, %p2542_p8 }
  0x46   : > { %p2132_p4 = pneg %p2131_p9 }
  0x48   : > { %p2137_p3 = pnand %p2135_p1, %p2132_p4 }
  0x4a   : > { %2140 = shalt.err (!%p2137_p3)
}
  0x4b   : > { %s2141_s19 = scalar_lea.vmem %s2530_s20, 16  ;;  %s2148_s10 = scalar_lea.vmem %s2530_s20, 32 }
  0x4c   : > { %p2142_p10 = scmp.ne.s32.totalorder %s2530_s20, %s2141_s19  ;;  %p2149_p13 = scmp.lt.s32.totalorder %s2530_s20, %s2530_s20 }
  0x4d   : > { %p2150_p0 = scmp.lt.s32.totalorder %s2148_s10, %s2141_s19 }
  0x4e   : > { %p2144_p11 = pnand %p2142_p10, %p2542_p8 }
  0x4f   : > { %p2151_p2 = por %p2150_p0, %p2149_p13 }
  0x50   : > { %p2145_p12 = pneg %p2144_p11 }
  0x52   : > { %p2152_p5 = pnand %p2151_p2, %p2145_p12 }
  0x54   : > { %2155 = shalt.err (!%p2152_p5)
}
  0x55   : > { %1975 = dma.hbm_to_vmem [thread:$0]  (!%p2526_p6), %s3012_s6, 16, %s2530_s20, [#allocation11]  }
  0x56   : > { %s3013_s8 = sld [smem:[#allocation31_spill]] }
  0x5c   : > { %s2156_s16 = scalar_lea.hbm %s3013_s8, 16 }
  0x5d   : > { %p2157_p7 = scmp.ne.s32.totalorder %s3013_s8, %s2156_s16  ;;  %p2163_p1 = scmp.lt.u32.totalorder %s2156_s16, %s3013_s8 }
  0x5f   : > { %p2159_p9 = pnand %p2157_p7, %p2542_p8 }
  0x61   : > { %p2160_p4 = pneg %p2159_p9 }
  0x63   : > { %p2165_p3 = pnand %p2163_p1, %p2160_p4 }
  0x65   : > { %2168 = shalt.err (!%p2165_p3)
}
  0x66   : > { %s2169_s20 = scalar_lea.vmem %s2532_s23, 16  ;;  %s2176_s10 = scalar_lea.vmem %s2532_s23, 32 }
  0x67   : > { %p2170_p10 = scmp.ne.s32.totalorder %s2532_s23, %s2169_s20  ;;  %p2177_p13 = scmp.lt.s32.totalorder %s2532_s23, %s2532_s23 }
  0x68   : > { %p2178_p0 = scmp.lt.s32.totalorder %s2176_s10, %s2169_s20 }
  0x69   : > { %p2172_p11 = pnand %p2170_p10, %p2542_p8 }
  0x6a   : > { %p2179_p2 = por %p2178_p0, %p2177_p13 }
  0x6b   : > { %p2173_p12 = pneg %p2172_p11 }
  0x6d   : > { %p2180_p5 = pnand %p2179_p2, %p2173_p12 }
  0x6f   : > { %2183 = shalt.err (!%p2180_p5)
}
  0x70   : > { %1978 = dma.hbm_to_vmem [thread:$0]  (!%p2526_p6), %s3013_s8, 16, %s2532_s23, [#allocation11]  }
  0x71   : > { %s2375_s18 = smov [#allocation13]   ;;  %s3014_s9 = sld [smem:[#allocation32_spill]] }
  0x72   : > { %s512_s12 = sshll.u32 %s2375_s18, 4  ;;  %s513_s12 = int_to_ptr.vmem [resolvable:$true] %s512_s12 }
  0x77   : > { %s2184_s17 = scalar_lea.hbm %s3014_s9, 16 }
  0x78   : > { %p2185_p7 = scmp.ne.s32.totalorder %s3014_s9, %s2184_s17  ;;  %p2191_p1 = scmp.lt.u32.totalorder %s2184_s17, %s3014_s9 }
  0x7a   : > { %p2187_p9 = pnand %p2185_p7, %p2542_p8 }
  0x7c   : > { %p2188_p4 = pneg %p2187_p9 }
  0x7e   : > { %p2193_p3 = pnand %p2191_p1, %p2188_p4 }
  0x80   : > { %2196 = shalt.err (!%p2193_p3)
}
  0x81   : > { %s2197_s23 = scalar_lea.vmem %s513_s12, 16  ;;  %s2204_s13 = scalar_lea.vmem %s513_s12, 32 }
  0x82   : > { %p2198_p10 = scmp.ne.s32.totalorder %s513_s12, %s2197_s23  ;;  %p2205_p13 = scmp.lt.s32.totalorder %s513_s12, %s513_s12 }
  0x83   : > { %p2206_p0 = scmp.lt.s32.totalorder %s2204_s13, %s2197_s23 }
  0x84   : > { %p2200_p11 = pnand %p2198_p10, %p2542_p8 }
  0x85   : > { %p2207_p2 = por %p2206_p0, %p2205_p13 }
  0x86   : > { %p2201_p12 = pneg %p2200_p11 }
  0x88   : > { %p2208_p5 = pnand %p2207_p2, %p2201_p12 }
  0x8a   : > { %2211 = shalt.err (!%p2208_p5)
}
  0x8b   : > { %1981 = dma.hbm_to_vmem [thread:$0]  (!%p2526_p6), %s3014_s9, 16, %s513_s12, [#allocation14]  }
  0x8c   : > { %s1757_s1 = sadd.s32 4294967294, %s2370_s29   ;;  %s50_s16 = sadd.s32 1, %s2366_s28 }
  0x8d   : > { %p52_p8 = scmp.ge.s32.totalorder %s50_s16, 2  ;;  %s59_s21 = sadd.s32 1, %s2358_s26 }
  0x8e   : > { %p66_p7 = scmp.ne.s32.totalorder %s2358_s26, %s2354_s25  ;;  %p67_p9 = scmp.eq.s32.totalorder %s2370_s29, 0 }
  0x8f   : > { %s3053_s16 = smov (%p52_p8, %s50_s16), 0  ;;  %p72_p1 = scmp.ne.s32.totalorder %s2354_s25, %s2350_s24 }
  0x90   : > { %3015 = sst [smem:[#allocation24_spill]] %s3053_s16  ;;  %p2632_p4 = por %p67_p9, %p66_p7 }
  0x91   : > { %s54_s12 = ssub.s32 %s2366_s28, %s3053_s16  ;;  %p444_p6 = scmp.eq.s32.totalorder %s2512_s0, 1 }
  0x92   : > { %p57_p3 = scmp.eq.s32.totalorder %s54_s12, 0  ;;  %p3017_p10 = scmp.eq.s32.totalorder %s2512_s0, 0 }
  0x93   : > { %p2647_p12 = por %p444_p6, %p66_p7  ;;  %p450_p13 = scmp.eq.s32.totalorder %s1757_s1, 1 }
  0x94   : > { %p2643_p11 = por %p3017_p10, %p72_p1  ;;  %p1997_p2 = scmp.lt.s32.totalorder %s2370_s29, 2 }
  0x95   : > { %s3019_s14 = scalar_select %p2647_p12, 1, 0 }
  0x96   : > { %s3018_s17 = scalar_select %p2643_p11, 1, 0 }
  0x97   : > { %s2652_s19 = scalar_select %p57_p3, %s2358_s26, %s59_s21  }
  0x98   : > { %p2654_p0 = por %p450_p13, %p72_p1  ;;  %s544_s10 = sand.u32 1, %s2358_s26  }
  0x99   : > { %3020 = sst [smem:[#allocation25_spill]] %s2652_s19  ;;  %s1765_s23 = sshll.u32 %s2366_s28, 6 }
  0x9a   : > { %s3021_s20 = scalar_select %p2654_p0, 1, 0 }
  0x9b   : > { %s2661_s13 = sshll.u32 %s544_s10, 2  ;;  %s3023_s12 = sld [smem:[#allocation27_spill]] }
  0x9c   : > { %3022 = sst [smem:[#allocation26_spill]] %s3021_s20  ;;  %s548_s1 = scalar_lea.vmem [#allocation4], %s2661_s13 }
  0x9d   : > { %s556_s21 = sshll.u32 %s548_s1, 4  ;;  %p2671_p5 = pnand %p1997_p2, %p2632_p4  ;;  %s2675_s21 = int_to_ptr.vmem [resolvable:$true] %s556_s21 }
  0x9e   : > { %s3025_s18 = sld [smem:[#allocation28_spill]]  ;;  %s545_s16 = scalar_lea.sflag [#allocation5], %s544_s10 }
  0x9f   : > { %p2214_p7 = pneg %p2671_p5 }
  0xa1   : > { %s2666_s4 = scalar_lea.hbm %s3023_s12, %s1765_s23  ;;  %s2217_s19 = scalar_lea.hbm %s3023_s12, 128 }
  0xa2   : > { %s2212_s28 = scalar_lea.hbm %s2666_s4, 64  ;;  %p2218_p1 = scmp.lt.u32.totalorder %s2666_s4, %s3023_s12 }
  0xa3   : > { %p2213_p8 = scmp.ne.s32.totalorder %s2666_s4, %s2212_s28  ;;  %p2219_p6 = scmp.lt.u32.totalorder %s2217_s19, %s2212_s28 }
  0xa4   : > { %s2680_s9 = scalar_lea.hbm %s3025_s18, %s1765_s23  ;;  %p2221_p10 = scmp.lt.u32.totalorder %s2212_s28, %s2666_s4 }
  0xa5   : > { %p2215_p9 = pnand %p2214_p7, %p2213_p8  ;;  %p2220_p3 = por %p2219_p6, %p2218_p1 }
  0xa7   : > { %p2216_p4 = pneg %p2215_p9  ;;  %p2222_p13 = por %p2221_p10, %p2220_p3 }
  0xa9   : > { %p2223_p2 = pnand %p2222_p13, %p2216_p4 }
  0xab   : > { %2226 = shalt.err (!%p2223_p2)
}
  0xac   : > { %s2227_s8 = scalar_lea.vmem %s2675_s21, 64  ;;  %s2376_s10 = smov [#allocation4]  }
  0xad   : > { %p2228_p8 = scmp.ne.s32.totalorder %s2675_s21, %s2227_s8  ;;  %s2232_s23 = sshll.u32 %s2376_s10, 4  ;;  %s2233_s23 = int_to_ptr.vmem [resolvable:$false] %s2232_s23 }
  0xae   : > { %s2234_s26 = scalar_lea.vmem %s2233_s23, 128  ;;  %p2235_p12 = scmp.lt.s32.totalorder %s2675_s21, %s2233_s23 }
  0xaf   : > { %p2230_p9 = pnand %p2228_p8, %p2214_p7  ;;  %p2236_p1 = scmp.lt.s32.totalorder %s2234_s26, %s2227_s8 }
  0xb1   : > { %p2231_p0 = pneg %p2230_p9  ;;  %p2237_p6 = por %p2236_p1, %p2235_p12 }
  0xb3   : > { %p2238_p3 = pnand %p2237_p6, %p2231_p0 }
  0xb5   : > { %2241 = shalt.err (!%p2238_p3)
}
  0xb6   : > { %1985 = dma.hbm_to_vmem [thread:$0]  (!%p2671_p5), %s2666_s4, 64, %s2675_s21, %s545_s16  }
  0xb7   : > { %s563_s28 = sand.u32 1, %s2370_s29   ;;  %s567_s19 = scalar_lea.vmem [#allocation7], %s2661_s13 }
  0xb8   : > { %s574_s20 = sshll.u32 %s567_s19, 4  ;;  %s564_s15 = scalar_lea.sflag [#allocation8], %s563_s28  ;;  %s575_s20 = int_to_ptr.vmem [resolvable:$true] %s574_s20 }
  0xb9   : > { %s2242_s22 = scalar_lea.hbm %s2680_s9, 64  ;;  %s2247_s10 = scalar_lea.hbm %s3025_s18, 128 }
  0xba   : > { %p2243_p12 = scmp.ne.s32.totalorder %s2680_s9, %s2242_s22  ;;  %p2248_p10 = scmp.lt.u32.totalorder %s2680_s9, %s3025_s18 }
  0xbb   : > { %p2249_p13 = scmp.lt.u32.totalorder %s2247_s10, %s2242_s22  ;;  %p2251_p8 = scmp.lt.u32.totalorder %s2242_s22, %s2680_s9 }
  0xbc   : > { %p2245_p0 = pnand %p2243_p12, %p2214_p7 }
  0xbd   : > { %p2250_p2 = por %p2249_p13, %p2248_p10 }
  0xbe   : > { %p2246_p4 = pneg %p2245_p0 }
  0xbf   : > { %p2252_p9 = por %p2251_p8, %p2250_p2 }
  0xc1   : > { %p2253_p1 = pnand %p2252_p9, %p2246_p4 }
  0xc3   : > { %2256 = shalt.err (!%p2253_p1)
}
  0xc4   : > { %s2257_s4 = scalar_lea.vmem %s575_s20, 64  ;;  %s2377_s16 = smov [#allocation7]  }
  0xc5   : > { %p2258_p6 = scmp.ne.s32.totalorder %s575_s20, %s2257_s4  ;;  %s2262_s13 = sshll.u32 %s2377_s16, 4  ;;  %s2263_s13 = int_to_ptr.vmem [resolvable:$false] %s2262_s13 }
  0xc6   : > { %s2264_s21 = scalar_lea.vmem %s2263_s13, 128  ;;  %p2265_p0 = scmp.lt.s32.totalorder %s575_s20, %s2263_s13 }
  0xc7   : > { %p2260_p3 = pnand %p2258_p6, %p2214_p7  ;;  %p2266_p11 = scmp.lt.s32.totalorder %s2264_s21, %s2257_s4 }
  0xc9   : > { %p2261_p12 = pneg %p2260_p3  ;;  %p2267_p10 = por %p2266_p11, %p2265_p0 }
  0xcb   : > { %p2268_p13 = pnand %p2267_p10, %p2261_p12 }
  0xcd   : > { %2271 = shalt.err (!%p2268_p13)
}
  0xce   : > { %1988 = dma.hbm_to_vmem [thread:$0]  (!%p2671_p5), %s2680_s9, 64, %s575_s20, %s564_s15  }
  0xcf   : > { %p3026_p4 = scmp.ne.s32.totalorder %s3008_s30, 0 }
  0xd0   : > { %s2731_s28 = sand.u32 (!%p3026_p4), 1, %s2354_s25   ;;  %p3027_p11 = scmp.ne.s32.totalorder (!%p3026_p4), %s3018_s17, 0 }
  0xd1   : > { %589 = sbr.rel (%p3026_p4) target bundleno = 2774 (0xad6), region = 88  ;;  %s2734_s19 = sshll.u32 (!%p3026_p4), %s2731_s28, 2 }
  0xd2   : > { %s592_s22 = scalar_lea.sflag (!%p3026_p4), [#allocation5], %s2731_s28  ;;  %s595_s1 = scalar_lea.vmem (!%p3026_p4), [#allocation4], %s2734_s19 }
  0xd8   : > { %2325 = dma.done.wait (%p3027_p11), %s592_s22, 64  }
  0xd9   : > { %2327 = vsyncadd (%p3027_p11), %s592_s22, 4294967232  ;;  %s600_s6 = sand.u32 1, %s2512_s0   ;;  %s604_s30 = scalar_lea.vmem [#allocation7], %s2734_s19 }
  0xda   : > { %s601_s9 = scalar_lea.sflag [#allocation8], %s600_s6 }
  0xdb   : > { %2329 = dma.done.wait (%p3027_p11), %s601_s9, 64  }
  0xdc   : > { %2331 = vsyncadd (%p3027_p11), %s601_s9, 4294967232  ;;  %p3028_p5 = scmp.eq.s32.totalorder %s2512_s0, 0 }
  0xde   : > { %2333 = dma.done.wait (%p3028_p5), [#allocation8], 16   ;;  %p3029_p7 = pmov %p3028_p5 }
  0xdf   : > { %p3030_p2 = pmov %p3028_p5 }
  0xe0   : > { %2335 = vsyncadd (%p3029_p7), [#allocation8], 4294967280 }
  0xe1   : > { %2337 = dma.done.wait (%p3030_p2), [#allocation11], 32   ;;  %p3031_p8 = pmov %p3030_p2 }
  0xe2   : > { %p3032_p9 = pmov %p3030_p2 }
  0xe3   : > { %2339 = vsyncadd (%p3031_p8), [#allocation11], 4294967264 }
  0xe4   : > { %2341 = dma.done.wait (%p3032_p9), [#allocation14], 16   ;;  %p3033_p1 = pmov %p3030_p2 }
  0xe5   : > { %v2378_v0 = vmov 0.0   ;;  %vm2379_vm0 = vmmov 0   ;;  %v2067_v1 = vld [vmem:[%s2968_s5] sm:$0xff]   ;;  %v2068_v2 = vld [vmem:[%s2968_s5 + $0x8] sm:$0xff]   ;;  %v687_v3 = vld [vmem:[%s604_s30] sm:$0xf] }
  0xe6   : > { %2343 = vsyncadd (%p3033_p1), [#allocation14], 4294967280  ;;  %1855 = vmatprep.subr.bf16.mxu1 %v2378_v0  ;;  %1859 = vmatprep.mubr.msk.bf16.mxu1 %vm2379_vm0, %v2378_v0  ;;  %vm711_vm1 = vcmask 261120   ;;  %v2069_v4 = vld [vmem:[%s2966_s3] sm:$0xff]   ;;  %v2070_v5 = vld [vmem:[%s2966_s3 + $0x8] sm:$0xff]   ;;  %vm756_vm2 = vcmask 519168  }
  0xe7   : > { %1871 = vmatprep.subr.bf16.mxu0 %v2378_v0  ;;  %1873 = vmatprep.mubr.msk.bf16.mxu0 %vm2379_vm0, %v2378_v0  ;;  %v2786_v6 = vld [vmem:[%s595_s1] sm:$0xf]  ;;  %v1776_v7 = vld [vmem:[#allocation10] ss:$0 sm:$0xff]  ;;  %v1780_v14 = vld [vmem:[#allocation9] ss:$0 sm:$0xff] }
  0xe8   : > { %1856 = vmatpush3.bf16.msra.mxu1 %v2067_v1  ;;  %vm836_vm3 = vcmask 64512   ;;  %s2380_s4 = smov 112   ;;  %s2381_s16 = smov 120   ;;  %vm903_vm4 = vcmask 1043456   ;;  %vm948_vm5 = vcmask 60416   ;;  %vm1068_vm6 = vcmask 126016  }
  0xe9   : > { %1857 = vmatprep.subr.bf16.mxu1 %v2378_v0  ;;  %s2382_s13 = smov 104   ;;  %p679_p6 = scmp.lt.s32.totalorder %s2362_s27, 1  ;;  %vm1187_vm7 = vcmask 191616   ;;  %vm1306_vm8 = vcmask 257216   ;;  %vm1514_vm9 = vcmask 523264   ;;  %vm1589_vm10 = vcmask 257024  }
  0xea   : > { %s2383_s9 = smov 96   ;;  %s2384_s30 = smov 80  }
  0xeb   : > { %s680_s21 = scalar_select %p679_p6, %s2362_s27, 1 }
  0xec   : > { %1858 = vmatpush3.bf16.msra.mxu1 %v2068_v2  ;;  %s2385_s17 = smov 72   ;;  %s2386_s20 = smov 88  }
  0xed   : > { %1863 = vmatprep.subr.bf16.mxu1 %v2378_v0  ;;  %s681_s6 = scalar_lea.vmem %s2965_s2, %s680_s21  ;;  %s2387_s0 = smov 8  }
  0xee   : > { %v1784_v33 = vld [vmem:[%s681_s6] ss:$0 sm:$0xff]  ;;  %s2388_s26 = smov 16   ;;  %s3035_s15 = sld [smem:[#allocation33_spill]] }
  0xef   : > { %1860 = vmatmul.mubr.msk.bf16.vlgmr.msra.gmra.mrb[0].mxu1 %vm711_vm1, %v687_v3  ;;  %s3037_s1 = sld [smem:[#allocation36_spill]]  ;;  %s1816_s8 = sshll.u32 %s2362_s27, 6 }
  0xf0   : > { %1864 = vmatpush3.bf16.msra.mxu1 %v2069_v4  ;;  %1867 = vmatprep.mubr.msk.bf16.mxu1 %vm2379_vm0, %v2378_v0  ;;  %s678_s10 = scalar_lea.vmem [#allocation15], %s2734_s19  ;;  %s1592_s21 = scalar_lea.sflag [#allocation6], %s2731_s28 }
  0xf1   : > { %1865 = vmatprep.subr.bf16.mxu1 %v2378_v0  ;;  %s1606_s23 = sshll.u32 %s678_s10, 4  ;;  %p3041_p12 = scmp.ne.s32.totalorder %s3019_s14, 0  ;;  %s2916_s23 = int_to_ptr.vmem [resolvable:$true] %s1606_s23 }
  0xf2   : > { %s2272_s22 = scalar_lea.vmem %s2916_s23, 64  ;;  %s2390_s27 = smov [#allocation15]  }
  0xf3   : > { %p2273_p3 = scmp.ne.s32.totalorder %s2916_s23, %s2272_s22  ;;  %s2276_s19 = sshll.u32 %s2390_s27, 4  ;;  %s2277_s19 = int_to_ptr.vmem [resolvable:$false] %s2276_s19 }
  0xf4   : > { %1866 = vmatpush3.bf16.msra.mxu1 %v2070_v5  ;;  %p2279_p13 = scmp.lt.s32.totalorder %s2916_s23, %s2277_s19 }
  0xf5   : > { %1877 = vmatprep.subr.bf16.mxu1 %v2378_v0  ;;  %p2274_p0 = pnand %p2273_p3, %p3041_p12 }
  0xf7   : > { %1868 = vmatmul.mubr.msk.bf16.vlgmr.msra.gmra.mrb[4].mxu1 %vm711_vm1, %v2786_v6  ;;  %p2275_p10 = pneg %p2274_p0 }
  0xf8   : > { %1879 = vmatprep.mubr.msk.bf16.mxu1 %vm2379_vm0, %v2378_v0 }
 0x1c2   : > { %v749_v8 = vpop.f32.mrb[0].mxu1 }
 0x1c3   : > { %v750_v9 = vadd.f32 %v1776_v7, %v749_v8  ;;  %v1861_v10 = vpop.f32.mrb[1].mxu1 }
 0x1c4   : > { %v752_v11 = vpop.f32.mrb[2].mxu1 }
 0x1c5   : > { %v755_v12 = vpack.c.bf16 %v750_v9, %v750_v9  ;;  %v1862_v13 = vpop.f32.mrb[3].mxu1 }
 0x1c7   : > { %757 = vst.msk [vmem:[#allocation2] sm:$0xf] %vm756_vm2, %v755_v12 }
 0x1ca   : > { %v821_v15 = vpop.f32.mrb[4].mxu1 }
 0x1cb   : > { %v1869_v16 = vpop.f32.mrb[5].mxu1  ;;  %v822_v18 = vadd.f32 %v1780_v14, %v821_v15 }
 0x1cc   : > { %v824_v17 = vpop.f32.mrb[6].mxu1 }
 0x1cd   : > { %v1870_v19 = vpop.f32.mrb[7].mxu1  ;;  %v827_v23 = vpack.c.bf16 %v822_v18, %v822_v18 }
 0x1ce   : > { %v829_v20 = vld [vmem:[#allocation2] sm:$0xf] }
 0x1cf   : > { %v841_v21 = vsel %vm836_vm3, %v829_v20, 0  ;;  %v2794_v22 = vcombine.low %v829_v20, %v829_v20 }
 0x1d0   : > { %1872 = vmatpush3.bf16.xpose.msra.mxu0 %v841_v21 }
 0x1d1   : > { %1072 = vrot.lane.b32.xlu1 %v2794_v22, %s2380_s4  ;;  %953 = vrot.lane.b32.xlu0 %v2794_v22, %s2381_s16 }
 0x1d2   : > { %1883 = vmatprep.subr.bf16.mxu0 %v2378_v0 }
 0x1d5   : > { %1070 = vrot.lane.b32.xlu1 %v827_v23, %s2380_s4  ;;  %951 = vrot.lane.b32.xlu0 %v827_v23, %s2381_s16  ;;  %s2389_s4 = smov 24   ;;  %s3040_s16 = sld [smem:[#allocation39_spill]] }
 0x1d7   : > { %1874 = vmatmul.mubr.msk.bf16.vlgmr.msra.gmra.mrb[0].mxu0 %vm836_vm3, %v827_v23 }
 0x1d8   : > { %1885 = vmatprep.mubr.msk.bf16.mxu0 %vm2379_vm0, %v2378_v0 }
 0x1d9   : > { %1189 = vrot.lane.b32.xlu1 %v827_v23, %s2382_s13  ;;  %1191 = vrot.lane.b32.xlu0 %v2794_v22, %s2382_s13  ;;  %s3036_s13 = sld [smem:[#allocation34_spill]] }
 0x243   : > { %v954_v24 = vpop.permute.xlu0 %953  ;;  %v1073_v26 = vpop.permute.xlu1 %1072 }
 0x244   : > { %v959_v25 = vsel %vm836_vm3, %v954_v24, 0  ;;  %v1078_v28 = vsel %vm836_vm3, %v1073_v26, 0 }
 0x245   : > { %1884 = vmatpush3.bf16.xpose.msra.mxu0 %v959_v25 }
 0x246   : > { %1895 = vmatprep.subr.bf16.mxu0 %v2378_v0 }
 0x247   : > { %v952_v27 = vpop.permute.xlu0 %951  ;;  %v1071_v30 = vpop.permute.xlu1 %1070 }
 0x24b   : > { %v1192_v29 = vpop.permute.xlu0 %1191  ;;  %v1190_v32 = vpop.permute.xlu1 %1189 }
 0x24c   : > { %1886 = vmatmul.mubr.msk.bf16.vlgmr.msra.gmra.mrb[4].mxu0 %vm836_vm3, %v952_v27  ;;  %v1197_v31 = vsel %vm836_vm3, %v1192_v29, 0 }
 0x24d   : > { %1896 = vmatpush3.bf16.xpose.msra.mxu0 %v1078_v28  ;;  %1897 = vmatprep.mubr.msk.bf16.mxu0 %vm2379_vm0, %v2378_v0 }
 0x24e   : > { %1907 = vmatprep.subr.bf16.mxu0 %v2378_v0 }
 0x254   : > { %1898 = vmatmul.mubr.msk.bf16.vlgmr.msra.gmra.mrb[8].mxu0 %vm836_vm3, %v1071_v30 }
 0x255   : > { %1908 = vmatpush3.bf16.xpose.msra.mxu0 %v1197_v31  ;;  %1909 = vmatprep.mubr.msk.bf16.mxu0 %vm2379_vm0, %v2378_v0 }
 0x256   : > { %1919 = vmatprep.subr.bf16.mxu0 %v2378_v0 }
 0x25c   : > { %1910 = vmatmul.mubr.msk.bf16.vlgmr.msra.gmra.mrb[12].mxu0 %vm836_vm3, %v1190_v32 }
 0x25d   : > { %1923 = vmatprep.mubr.msk.bf16.mxu0 %vm2379_vm0, %v2378_v0 }
 0x2aa   : > { %v877_v34 = vpop.f32.mrb[0].mxu0 }
 0x2ab   : > { %v878_v35 = vadd.f32 %v1784_v33, %v877_v34  ;;  %v1875_v36 = vpop.f32.mrb[1].mxu0 }
 0x2ac   : > { %v880_v37 = vpop.f32.mrb[2].mxu0 }
 0x2ad   : > { %v1876_v38 = vpop.f32.mrb[3].mxu0  ;;  %v883_v39 = vsel %vm836_vm3, %v878_v35, -inf }
 0x2ae   : > { %884 = vmax.xlane.f32.xlu0 %v883_v39 }
 0x31f   : > { %v995_v40 = vpop.f32.mrb[4].mxu0 }
 0x320   : > { %v996_v41 = vadd.f32 %v1784_v33, %v995_v40  ;;  %v1887_v42 = vpop.f32.mrb[5].mxu0 }
 0x321   : > { %v998_v43 = vpop.f32.mrb[6].mxu0 }
 0x322   : > { %v1888_v44 = vpop.f32.mrb[7].mxu0  ;;  %v1001_v45 = vsel %vm836_vm3, %v996_v41, -inf }
 0x323   : > { %1002 = vmax.xlane.f32.xlu1 %v1001_v45 }
 0x327   : > { %v1114_v46 = vpop.f32.mrb[8].mxu0 }
 0x328   : > { %v1115_v47 = vadd.f32 %v1784_v33, %v1114_v46  ;;  %v1899_v48 = vpop.f32.mrb[9].mxu0 }
 0x329   : > { %v1117_v49 = vpop.f32.mrb[10].mxu0 }
 0x32a   : > { %v1900_v50 = vpop.f32.mrb[11].mxu0  ;;  %v1120_v51 = vsel %vm836_vm3, %v1115_v47, -inf }
 0x32b   : > { %1121 = vmax.xlane.f32.xlu0 %v1120_v51  ;;  %v2072_v50 = vld [vmem:[%s2970_s7] sm:$0xff]  }
 0x32c   : > { %1920 = vmatpush3.bf16.msra.mxu0 %v2072_v50 }
 0x32d   : > { %1921 = vmatprep.subr.bf16.mxu0 %v2378_v0 }
 0x32f   : > { %v1233_v52 = vpop.f32.mrb[12].mxu0 }
 0x330   : > { %v1234_v53 = vadd.f32 %v1784_v33, %v1233_v52  ;;  %v1911_v54 = vpop.f32.mrb[13].mxu0  ;;  %v2073_v52 = vld [vmem:[%s2970_s7 + $0x8] sm:$0xff]  }
 0x331   : > { %v1236_v55 = vpop.f32.mrb[14].mxu0  ;;  %1922 = vmatpush3.bf16.msra.mxu0 %v2073_v52 }
 0x332   : > { %v1912_v56 = vpop.f32.mrb[15].mxu0  ;;  %v1239_v57 = vsel %vm836_vm3, %v1234_v53, -inf  ;;  %1935 = vmatprep.subr.bf16.mxu0 %v2378_v0 }
 0x333   : > { %1240 = vmax.xlane.f32.xlu0 %v1239_v57 }
 0x33b   : > { %v885_v58 = vpop.xlane.xlu0 %884 }
 0x33c   : > { %v886_v59 = vsub.f32 %v878_v35, %v885_v58 }
 0x33e   : > { %v887_v60 = vmul.f32 1.442695, %v886_v59 }
 0x340   : > { %2080 = vpow2.f32 %v887_v60 }
 0x34a   : > { %v2081_v61 = vpop.eup %2080 }
 0x34b   : > { %v889_v62 = vsel %vm836_vm3, %v2081_v61, 0.0 }
 0x34c   : > { %890 = vadd.xlane.f32.xlu1 %v889_v62 }
 0x35d   : > { %898 = vrot.lane.b32.xlu1 %v2794_v22, %s2383_s9  ;;  %s3034_s9 = sld [smem:[#allocation35_spill]] }
 0x3b0   : > { %v1003_v63 = vpop.xlane.xlu1 %1002 }
 0x3b1   : > { %v1004_v1 = vsub.f32 %v996_v41, %v1003_v63 }
 0x3b3   : > { %v1005_v2 = vmul.f32 1.442695, %v1004_v1 }
 0x3b5   : > { %2082 = vpow2.f32 %v1005_v2 }
 0x3b8   : > { %v1122_v3 = vpop.xlane.xlu0 %1121 }
 0x3b9   : > { %v1123_v4 = vsub.f32 %v1115_v47, %v1122_v3  ;;  %v1797_v3 = vld [vmem:[#allocation12] ss:$0 sm:$0xff] }
 0x3bb   : > { %v1124_v5 = vmul.f32 1.442695, %v1123_v4  ;;  %v759_v4 = vunpack.c.l.bf16 %v2786_v6  ;;  %v2074_v6 = vld [vmem:[%s2974_s11] sm:$0xff]  }
 0x3bd   : > { %2084 = vpow2.f32 %v1124_v5 }
 0x3bf   : > { %v2083_v7 = vpop.eup %2082 }
 0x3c0   : > { %v1241_v8 = vpop.xlane.xlu0 %1240  ;;  %v1007_v9 = vsel %vm836_vm3, %v2083_v7, 0.0 }
 0x3c1   : > { %v1242_v10 = vsub.f32 %v1234_v53, %v1241_v8  ;;  %1008 = vadd.xlane.f32.xlu0 %v1007_v9 }
 0x3c3   : > { %v1243_v11 = vmul.f32 1.442695, %v1242_v10 }
 0x3c5   : > { %2086 = vpow2.f32 %v1243_v11 }
 0x3c7   : > { %v2085_v12 = vpop.eup %2084 }
 0x3c8   : > { %v1126_v13 = vsel %vm836_vm3, %v2085_v12, 0.0 }
 0x3c9   : > { %1127 = vadd.xlane.f32.xlu1 %v1126_v13 }
 0x3cf   : > { %v2087_v14 = vpop.eup %2086 }
 0x3d0   : > { %v1245_v15 = vsel %vm836_vm3, %v2087_v14, 0.0 }
 0x3d1   : > { %1246 = vadd.xlane.f32.xlu0 %v1245_v15 }
 0x3d9   : > { %v891_v16 = vpop.xlane.xlu1 %890 }
 0x3da   : > { %2088 = vrcp.f32 %v891_v16  ;;  %1132 = vrot.lane.b32.xlu1 %v2794_v22, %s2384_s30 }
 0x3dd   : > { %v899_v17 = vpop.permute.xlu1 %898 }
 0x3de   : > { %v905_v18 = vsel %vm903_vm4, %v899_v17, 0  ;;  %1251 = vrot.lane.b32.xlu1 %v2794_v22, %s2385_s17  ;;  %s3038_s17 = sld [smem:[#allocation37_spill]] }
 0x3df   : > { %1878 = vmatpush3.bf16.msra.mxu1 %v905_v18  ;;  %v2075_v18 = vld [vmem:[%s2974_s11 + $0x8] sm:$0xff]  }
 0x3e0   : > { %1889 = vmatprep.subr.bf16.mxu1 %v2378_v0 }
 0x3e4   : > { %v2089_v19 = vpop.eup %2088 }
 0x3e5   : > { %v893_v20 = vmul.f32 %v2089_v19, %v2081_v61  ;;  %v2076_v19 = vld [vmem:[%s3034_s9] sm:$0xff]  }
 0x3e7   : > { %1013 = vrot.lane.b32.xlu0 %v2794_v22, %s2386_s20  ;;  %v894_v21 = vpack.c.bf16 %v893_v20, %v893_v20  ;;  %v2077_v20 = vld [vmem:[%s3034_s9 + $0x8] sm:$0xff]  }
 0x3e9   : > { %1880 = vmatmul.mubr.msk.bf16.vlgmr.msra.gmra.mrb[8].mxu1 %vm836_vm3, %v894_v21 }
 0x3ea   : > { %1891 = vmatprep.mubr.msk.bf16.mxu1 %vm2379_vm0, %v2378_v0 }
 0x44e   : > { %v1009_v23 = vpop.xlane.xlu0 %1008 }
 0x44f   : > { %2090 = vrcp.f32 %v1009_v23 }
 0x456   : > { %v1128_v24 = vpop.xlane.xlu1 %1127 }
 0x457   : > { %2092 = vrcp.f32 %v1128_v24 }
 0x459   : > { %v2091_v25 = vpop.eup %2090 }
 0x45a   : > { %v1011_v27 = vmul.f32 %v2091_v25, %v2083_v7  ;;  %v1133_v30 = vpop.permute.xlu1 %1132 }
 0x45b   : > { %v1138_v32 = vsel %vm903_vm4, %v1133_v30, 0 }
 0x45c   : > { %v1012_v22 = vpack.c.bf16 %v1011_v27, %v1011_v27 }
 0x45e   : > { %v1247_v26 = vpop.xlane.xlu0 %1246  ;;  %v1252_v34 = vpop.permute.xlu1 %1251 }
 0x45f   : > { %2094 = vrcp.f32 %v1247_v26  ;;  %v1257_v37 = vsel %vm903_vm4, %v1252_v34, 0  ;;  %v1801_v26 = vld [vmem:[#allocation13] ss:$0 sm:$0xff] }
 0x461   : > { %v2093_v31 = vpop.eup %2092 }
 0x462   : > { %v1014_v28 = vpop.permute.xlu0 %1013  ;;  %v1130_v33 = vmul.f32 %v2093_v31, %v2085_v12  ;;  %v2078_v31 = vld [vmem:[%s3034_s9 + $0x10] sm:$0xff]  }
 0x463   : > { %v1019_v29 = vsel %vm903_vm4, %v1014_v28, 0  ;;  %v1802_v28 = vld [vmem:[%s3035_s15] ss:$0 sm:$0xff]  ;;  %s3039_s15 = sld [smem:[#allocation38_spill]] }
 0x464   : > { %1890 = vmatpush3.bf16.msra.mxu1 %v1019_v29  ;;  %v1131_v35 = vpack.c.bf16 %v1130_v33, %v1130_v33  ;;  %v1803_v33 = vld [vmem:[%s3036_s13] ss:$0 sm:$0xff]  ;;  %s2914_s13 = scalar_lea.hbm %s3040_s16, %s1816_s8 }
 0x465   : > { %1901 = vmatprep.subr.bf16.mxu1 %v2378_v0 }
 0x467   : > { %1892 = vmatmul.mubr.msk.bf16.vlgmr.msra.gmra.mrb[12].mxu1 %vm836_vm3, %v1012_v22 }
 0x468   : > { %1902 = vmatpush3.bf16.msra.mxu1 %v1138_v32  ;;  %1903 = vmatprep.mubr.msk.bf16.mxu1 %vm2379_vm0, %v2378_v0  ;;  %v2079_v32 = vld [vmem:[%s3034_s9 + $0x18] sm:$0xff]  }
 0x469   : > { %1913 = vmatprep.subr.bf16.mxu1 %v2378_v0  ;;  %v2095_v36 = vpop.eup %2094 }
 0x46a   : > { %v1249_v38 = vmul.f32 %v2095_v36, %v2087_v14 }
 0x46c   : > { %v1250_v39 = vpack.c.bf16 %v1249_v38, %v1249_v38 }
 0x46f   : > { %1904 = vmatmul.mubr.msk.bf16.vlgmr.msra.gmra.mrb[16].mxu1 %vm836_vm3, %v1131_v35 }
 0x470   : > { %1914 = vmatpush3.bf16.msra.mxu1 %v1257_v37  ;;  %1915 = vmatprep.mubr.msk.bf16.mxu1 %vm2379_vm0, %v2378_v0 }
 0x471   : > { %1927 = vmatprep.subr.bf16.mxu1 %v2378_v0 }
 0x477   : > { %1916 = vmatmul.mubr.msk.bf16.vlgmr.msra.gmra.mrb[20].mxu1 %vm836_vm3, %v1250_v39 }
 0x478   : > { %1931 = vmatprep.mubr.msk.bf16.mxu1 %vm2379_vm0, %v2378_v0  ;;  %1928 = vmatpush3.bf16.msra.mxu1 %v2074_v6 }
 0x479   : > { %1929 = vmatprep.subr.bf16.mxu1 %v2378_v0 }
 0x47c   : > { %1930 = vmatpush3.bf16.msra.mxu1 %v2075_v18 }
 0x4bc   : > { %v941_v40 = vpop.f32.mrb[8].mxu1 }
 0x4bd   : > { %v947_v41 = vpack.c.bf16 %v941_v40, %v941_v40  ;;  %v1881_v42 = vpop.f32.mrb[9].mxu1 }
 0x4be   : > { %v944_v43 = vpop.f32.mrb[10].mxu1 }
 0x4bf   : > { %949 = vst.msk [vmem:[#allocation3] sm:$0xf] %vm948_vm5, %v947_v41  ;;  %v1882_v44 = vpop.f32.mrb[11].mxu1 }
 0x53a   : > { %v1055_v45 = vpop.f32.mrb[12].mxu1 }
 0x53b   : > { %v1819_v46 = vpack.c.bf16 %v1055_v45, %v1055_v45  ;;  %v1893_v47 = vpop.f32.mrb[13].mxu1 }
 0x53c   : > { %v1058_v48 = vpop.f32.mrb[14].mxu1 }
 0x53d   : > { %1065 = vrot.lane.b32.xlu0 %v1819_v46, %s2387_s0  ;;  %v1894_v49 = vpop.f32.mrb[15].mxu1 }
 0x542   : > { %v1174_v51 = vpop.f32.mrb[16].mxu1 }
 0x543   : > { %v1820_v53 = vpack.c.bf16 %v1174_v51, %v1174_v51  ;;  %v1905_v54 = vpop.f32.mrb[17].mxu1 }
 0x544   : > { %v1177_v55 = vpop.f32.mrb[18].mxu1 }
 0x545   : > { %1184 = vrot.lane.b32.xlu1 %v1820_v53, %s2388_s26  ;;  %v1906_v56 = vpop.f32.mrb[19].mxu1 }
 0x54a   : > { %v1293_v57 = vpop.f32.mrb[20].mxu1 }
 0x54b   : > { %v1821_v58 = vpack.c.bf16 %v1293_v57, %v1293_v57  ;;  %v1917_v59 = vpop.f32.mrb[21].mxu1  ;;  %v1813_v57 = vld [vmem:[%s3038_s17] ss:$0 sm:$0xff] }
 0x54c   : > { %v1296_v60 = vpop.f32.mrb[22].mxu1  ;;  %v1814_v59 = vld [vmem:[%s3039_s15] ss:$0 sm:$0xff] }
 0x54d   : > { %1303 = vrot.lane.b32.xlu0 %v1821_v58, %s2389_s4  ;;  %v1918_v61 = vpop.f32.mrb[23].mxu1 }
 0x5af   : > { %v1066_v62 = vpop.permute.xlu0 %1065 }
 0x5b0   : > { %1069 = vst.msk [vmem:[#allocation3] sm:$0xf] %vm1068_vm6, %v1066_v62 }
 0x5b7   : > { %v1185_v63 = vpop.permute.xlu1 %1184 }
 0x5b8   : > { %1188 = vst.msk [vmem:[#allocation3] sm:$0xf] %vm1187_vm7, %v1185_v63 }
 0x5bf   : > { %v1304_v1 = vpop.permute.xlu0 %1303 }
 0x5c0   : > { %1307 = vst.msk [vmem:[#allocation3] sm:$0xf] %vm1306_vm8, %v1304_v1 }
 0x5c7   : > { %v1308_v2 = vld [vmem:[#allocation3] sm:$0xf] }
 0x5c8   : > { %1924 = vmatmul.mubr.msk.bf16.vlgmr.msra.gmra.mrb[16].mxu0 %vm711_vm1, %v1308_v2 }
 0x5c9   : > { %1943 = vmatprep.mubr.msk.bf16.mxu0 %vm2379_vm0, %v2378_v0  ;;  %1936 = vmatpush3.bf16.msra.mxu0 %v2076_v19 }
 0x5ca   : > { %1937 = vmatprep.subr.bf16.mxu0 %v2378_v0 }
 0x5cd   : > { %1938 = vmatpush3.bf16.msra.mxu0 %v2077_v20 }
 0x5ce   : > { %1939 = vmatprep.subr.bf16.mxu0 %v2378_v0 }
 0x5d1   : > { %1940 = vmatpush3.bf16.msra.mxu0 %v2078_v31 }
 0x5d2   : > { %1941 = vmatprep.subr.bf16.mxu0 %v2378_v0  ;;  %v1807_v0 = vld [vmem:[%s3037_s1] ss:$0 sm:$0xff]  ;;  %s2278_s1 = scalar_lea.vmem %s2277_s19, 128 }
 0x5d3   : > { %p2280_p4 = scmp.lt.s32.totalorder %s2278_s1, %s2272_s22 }
 0x5d5   : > { %1942 = vmatpush3.bf16.msra.mxu0 %v2079_v32  ;;  %p2281_p11 = por %p2280_p4, %p2279_p13 }
 0x5d7   : > { %p2282_p5 = pnand %p2281_p11, %p2275_p10 }
 0x69b   : > { %v1369_v5 = vpop.f32.mrb[16].mxu0 }
 0x69c   : > { %v1370_v7 = vadd.f32 %v1797_v3, %v1369_v5  ;;  %v1925_v8 = vpop.f32.mrb[17].mxu0 }
 0x69d   : > { %v1372_v9 = vpop.f32.mrb[18].mxu0 }
 0x69e   : > { %v1926_v10 = vpop.f32.mrb[19].mxu0  ;;  %v1375_v11 = vadd.f32 %v1370_v7, %v759_v4 }
 0x6a0   : > { %v1376_v12 = vsel %vm711_vm1, %v1375_v11, 0.0 }
 0x6a1   : > { %1377 = vadd.xlane.f32.xlu1 %v1376_v12 }
 0x72e   : > { %v1378_v13 = vpop.xlane.xlu1 %1377 }
 0x72f   : > { %v1380_v14 = vmul.f32 0.03125, %v1378_v13 }
 0x731   : > { %v1381_v15 = vsub.f32 %v1375_v11, %v1380_v14 }
 0x733   : > { %v1382_v16 = vmul.f32 %v1381_v15, %v1381_v15 }
 0x735   : > { %v1383_v17 = vsel %vm711_vm1, %v1382_v16, 0.0 }
 0x736   : > { %1384 = vadd.xlane.f32.xlu0 %v1383_v17 }
 0x7c3   : > { %v1385_v21 = vpop.xlane.xlu0 %1384 }
 0x7c4   : > { %v1386_v23 = vmul.f32 0.03125, %v1385_v21 }
 0x7c6   : > { %v1387_v24 = vadd.f32 1e-12, %v1386_v23 }
 0x7c8   : > { %2096 = vrsqrt.f32 %v1387_v24 }
 0x7d2   : > { %v2097_v25 = vpop.eup %2096 }
 0x7d3   : > { %v1389_v27 = vmul.f32 %v2097_v25, %v1381_v15 }
 0x7d5   : > { %v1397_v29 = vmul.f32 %v1801_v26, %v1389_v27 }
 0x7d7   : > { %v1405_v30 = vadd.f32 %v1802_v28, %v1397_v29 }
 0x7d9   : > { %v1406_v22 = vpack.c.bf16 %v1405_v30, %v1405_v30 }
 0x7db   : > { %1932 = vmatmul.mubr.msk.bf16.vlgmr.msra.gmra.mrb[24].mxu1 %vm711_vm1, %v1406_v22 }
 0x8ae   : > { %v1467_v34 = vpop.f32.mrb[24].mxu1 }
 0x8af   : > { %v1468_v35 = vadd.f32 %v1803_v33, %v1467_v34  ;;  %v1933_v36 = vpop.f32.mrb[25].mxu1 }
 0x8b0   : > { %v1470_v37 = vpop.f32.mrb[26].mxu1 }
 0x8b1   : > { %v1473_v38 = vmax.f32 %v1468_v35, 0.0  ;;  %v1934_v39 = vpop.f32.mrb[27].mxu1 }
 0x8b3   : > { %v1474_v40 = vpack.c.bf16 %v1473_v38, %v1473_v38 }
 0x8b5   : > { %1944 = vmatmul.mubr.msk.bf16.vlgmr.msra.gmra.mrb[20].mxu0 %vm1514_vm9, %v1474_v40 }
 0x988   : > { %v1552_v41 = vpop.f32.mrb[20].mxu0 }
 0x989   : > { %v1553_v42 = vadd.f32 %v1807_v0, %v1552_v41  ;;  %v1945_v43 = vpop.f32.mrb[21].mxu0 }
 0x98a   : > { %v1555_v44 = vpop.f32.mrb[22].mxu0 }
 0x98b   : > { %v1946_v45 = vpop.f32.mrb[23].mxu0  ;;  %v1558_v46 = vadd.f32 %v1553_v42, %v1405_v30 }
 0x98d   : > { %v1559_v47 = vsel %vm711_vm1, %v1558_v46, 0.0 }
 0x98e   : > { %1560 = vadd.xlane.f32.xlu0 %v1559_v47 }
 0xa1b   : > { %v1561_v48 = vpop.xlane.xlu0 %1560 }
 0xa1c   : > { %v1562_v49 = vmul.f32 0.03125, %v1561_v48 }
 0xa1e   : > { %v1563_v50 = vsub.f32 %v1558_v46, %v1562_v49 }
 0xa20   : > { %v1564_v51 = vmul.f32 %v1563_v50, %v1563_v50 }
 0xa22   : > { %v1565_v52 = vsel %vm711_vm1, %v1564_v51, 0.0 }
 0xa23   : > { %1566 = vadd.xlane.f32.xlu1 %v1565_v52 }
 0xab0   : > { %v1567_v53 = vpop.xlane.xlu1 %1566 }
 0xab1   : > { %v1568_v54 = vmul.f32 0.03125, %v1567_v53 }
 0xab3   : > { %v1569_v55 = vadd.f32 1e-12, %v1568_v54 }
 0xab5   : > { %2098 = vrsqrt.f32 %v1569_v55 }
 0xabf   : > { %v2099_v56 = vpop.eup %2098 }
 0xac0   : > { %v1571_v58 = vmul.f32 %v2099_v56, %v1563_v50 }
 0xac2   : > { %v1579_v60 = vmul.f32 %v1813_v57, %v1571_v58 }
 0xac4   : > { %v1587_v61 = vadd.f32 %v1814_v59, %v1579_v60 }
 0xac6   : > { %v1588_v62 = vpack.c.bf16 %v1587_v61, %v1587_v61 }
 0xac8   : > { %1590 = vst.msk [vmem:[%s678_s10] sm:$0xf] %vm1589_vm10, %v1588_v62 }
 0xac9   : > { %2285 = shalt.err (!%p2282_p5)
}
 0xaca   : > { %s2286_s28 = scalar_lea.hbm %s2914_s13, 64  ;;  %s2290_s17 = scalar_lea.hbm %s3040_s16, 128 }
 0xacb   : > { %p2287_p7 = scmp.ne.s32.totalorder %s2914_s13, %s2286_s28  ;;  %p2291_p9 = scmp.lt.u32.totalorder %s2914_s13, %s3040_s16 }
 0xacc   : > { %p2292_p1 = scmp.lt.u32.totalorder %s2290_s17, %s2286_s28  ;;  %p2294_p3 = scmp.lt.u32.totalorder %s2286_s28, %s2914_s13 }
 0xacd   : > { %p2288_p2 = pnand %p2287_p7, %p3041_p12 }
 0xace   : > { %p2293_p6 = por %p2292_p1, %p2291_p9 }
 0xacf   : > { %p2289_p8 = pneg %p2288_p2 }
 0xad0   : > { %p2295_p0 = por %p2294_p3, %p2293_p6 }
 0xad2   : > { %p2296_p10 = pnand %p2295_p0, %p2289_p8 }
 0xad4   : > { %2299 = shalt.err (!%p2296_p10)
}
 0xad5   : > { %1967 = dma.vmem_to_hbm [thread:$0]  (%p3041_p12), %s2916_s23, 64, %s2914_s13, %s1592_s21  }
 0xad6 PF: > { %s3042_s15 = sld [smem:[#allocation26_spill]]  ;;  %s1618_s8 = sand.u32 1, %s2350_s24  }
 0xad7   : > { %p3044_p4 = scmp.ge.s32.totalorder %s2370_s29, 2  ;;  %s1619_s10 = scalar_lea.sflag [#allocation6], %s1618_s8 }
 0xadc   : > { %p3043_p13 = scmp.ne.s32.totalorder %s3042_s15, 0 }
 0xade   : > { %p1990_p11 = pnand %p3044_p4, %p3043_p13 }
 0xae0   : > { %2345 = dma.done.wait (!%p1990_p11), %s1619_s10, 64  }
 0xae1   : > { %2347 = vsyncadd (!%p1990_p11), %s1619_s10, 4294967232  ;;  %s38_s29 = sadd.s32 1, %s2370_s29   ;;  %s3045_s26 = sld [smem:[#allocation22_spill]] }
 0xae2   : > { %p35_p5 = scmp.ge.s32.totalorder %s38_s29, 4   ;;  %s3046_s14 = sld [smem:[#allocation25_spill]] }
 0xae3   : > { %s3047_s27 = sld [smem:[#allocation23_spill]]  ;;  %s3048_s28 = sld [smem:[#allocation24_spill]] }
 0xae4   : > { %s3049_s24 = smov %s2354_s25  ;;  %37 = sbr.rel (!%p35_p5) target bundleno = 24 (0x18), region = 169 }
 0xae7   : > { %s3050_s25 = smov %s3045_s26 }
 0xae8   : > { %s3051_s26 = smov %s3046_s14 }
 0xaeb   :  { %1624 = vsyncpa [#allocation5], 1 }
 0xaec   :  { %1626 = vsyncpa [#allocation5 + $0x1], 1 }
 0xaed   :  { %1627 = vsyncpa [#allocation8], 1 }
 0xaee   :  { %1629 = vsyncpa [#allocation8 + $0x1], 1 }
 0xaef   :  { %1630 = vsyncpa [#allocation11], 1 }
 0xaf0   :  { %1631 = vsyncpa [#allocation14], 1 }
 0xaf1   :  { %1632 = vsyncpa [#allocation6], 1 }
 0xaf2   :  { %1634 = vsyncpa [#allocation6 + $0x1], 1 }

</bundles_post_ra>
